<compile_context>
chip_gen: v7x
topology: tpu7x:2x2x1
jax: 0.10.0
libtpu: 0.0.40
codegen_flags: <defaults>
</compile_context>

<pallas_src>
import jax
import jax.numpy as jnp
from jax import lax
from jax.experimental import pallas as pl
from jax.experimental.pallas import tpu as pltpu

# ----------------------- model hyper-params (small but faithful) ------------
BATCH = 2
CHANNELS = 3
IMG = 32            # H == W
PATCH = 16          # -> 4 patches per image
VISION_DIM = 1024   # matches self.vision_dim in VisionModel (lora backbone)
PROJ_DIM = 512      # matches proj_dim default
PATCH_DIM = CHANNELS * PATCH * PATCH  # 768


# ----------------------------- fused Pallas kernel ---------------------------
def _vision_fused_kernel(pooled_ref, w_embed_ref, w_proj_ref, out_ref):
    """Backbone stub + ProjectionLayer, fused.

    pooled_ref:  (B, PATCH_DIM)            f32  (mean over patches, done in XLA)
    w_embed_ref: (PATCH_DIM, VISION_DIM)   bf16
    w_proj_ref:  (VISION_DIM, PROJ_DIM)    bf16 (PyTorch Linear weight, pre-transposed)
    out_ref:     (B, PROJ_DIM)             f32
    """
    # --- backbone stub: patch-embed matmul (pool already applied) -----------
    x = pooled_ref[...].astype(jnp.bfloat16)
    emb = jnp.dot(x, w_embed_ref[...], preferred_element_type=jnp.float32)

    # --- ProjectionLayer.norm_modality: x = x / x.norm(dim=-1, keepdim=True)
    emb = emb * lax.rsqrt(jnp.sum(emb * emb, axis=-1, keepdims=True))

    # --- ProjectionLayer.projection: Linear(vision_dim -> proj_dim, bias=False)
    y = jnp.dot(emb.astype(jnp.bfloat16), w_proj_ref[...],
                preferred_element_type=jnp.float32)

    # --- ProjectionLayer.norm_projection -------------------------------------
    out_ref[...] = y * lax.rsqrt(jnp.sum(y * y, axis=-1, keepdims=True))


def _vmem_spec():
    return pl.BlockSpec(memory_space=pltpu.MemorySpace.VMEM)


# ------------------------------- wrapper -------------------------------------
def vision_model_forward(pixel_values, params):
    """Full VisionModel.forward: backbone stub -> ProjectionLayer (one kernel)."""
    B, C, H, W = pixel_values.shape
    nh, nw = H // PATCH, W // PATCH
    # glue: patchify NCHW -> (B, num_patches, C*PATCH*PATCH), then mean-pool.
    # mean(X) @ W == mean(X @ W): pooling first cuts MXU rows by num_patches
    # and keeps the kernel inputs 2-D / lane-aligned.
    patches = pixel_values.reshape(B, C, nh, PATCH, nw, PATCH)
    patches = patches.transpose(0, 2, 4, 1, 3, 5).reshape(B, nh * nw, PATCH_DIM)
    pooled = jnp.mean(patches, axis=1)  # (B, PATCH_DIM), tiny

    w_embed = params["w_embed"]    # bf16 (PATCH_DIM, VISION_DIM)
    w_proj_t = params["w_proj_t"]  # bf16 (VISION_DIM, PROJ_DIM)

    cost = pl.CostEstimate(
        flops=2 * B * PATCH_DIM * VISION_DIM + 2 * B * VISION_DIM * PROJ_DIM,
        transcendentals=2 * B,
        bytes_accessed=(pooled.size * 4
                        + w_embed.size * 2
                        + w_proj_t.size * 2
                        + B * PROJ_DIM * 4),
    )

    return pl.pallas_call(
        _vision_fused_kernel,
        out_shape=jax.ShapeDtypeStruct((B, PROJ_DIM), jnp.float32),
        in_specs=[_vmem_spec(), _vmem_spec(), _vmem_spec()],
        out_specs=_vmem_spec(),
        cost_estimate=cost,
    )(pooled, w_embed, w_proj_t)


# ------------------------- pure-JAX reference (check) ------------------------
def vision_model_ref(pixel_values, params):
    """f32 reference in the original (matmul-then-pool) order."""
    B, C, H, W = pixel_values.shape
    nh, nw = H // PATCH, W // PATCH
    patches = pixel_values.reshape(B, C, nh, PATCH, nw, PATCH)
    patches = patches.transpose(0, 2, 4, 1, 3, 5).reshape(B, nh * nw, PATCH_DIM)
    w_embed = params["w_embed"].astype(jnp.float32)
    w_proj_t = params["w_proj_t"].astype(jnp.float32)
    emb = jnp.mean(patches @ w_embed, axis=1)
    x = emb / jnp.linalg.norm(emb, axis=-1, keepdims=True)
    y = x @ w_proj_t
    return y / jnp.linalg.norm(y, axis=-1, keepdims=True)


# --------------------------------- main --------------------------------------
if __name__ == "__main__":
    key = jax.random.PRNGKey(0)
    k_pix, k_embed, k_proj = jax.random.split(key, 3)

    pixel_values = jax.random.normal(
        k_pix, (BATCH, CHANNELS, IMG, IMG), dtype=jnp.float32
    )

    # Deterministic parameter init (synthetic, not a checkpoint load).
    # Weights stored in bf16: the kernel is HBM-bound on weight streaming,
    # and bf16 is the native MXU input dtype; accumulation stays f32.
    w_embed = (jax.random.normal(k_embed, (PATCH_DIM, VISION_DIM), dtype=jnp.float32)
               * (1.0 / jnp.sqrt(PATCH_DIM))).astype(jnp.bfloat16)
    # PyTorch Linear weight is (PROJ_DIM, VISION_DIM); store its transpose.
    w_proj = (jax.random.normal(k_proj, (PROJ_DIM, VISION_DIM), dtype=jnp.float32)
              * (1.0 / jnp.sqrt(VISION_DIM))).astype(jnp.bfloat16)
    params = {"w_embed": w_embed, "w_proj_t": w_proj.T}

    out = vision_model_forward(pixel_values, params)
    out = jax.block_until_ready(out)

    ref = vision_model_ref(pixel_values, params)
    assert out.shape == (BATCH, PROJ_DIM), out.shape
    # Tolerance covers bf16 activation quantization inside the kernel.
    assert jnp.allclose(out, ref, rtol=2e-2, atol=2e-2), "mismatch vs reference"

    print("KERNEL_OK")
</pallas_src>

<mosaic_0001>
module attributes {stable_mosaic.version = 11 : i64} {
  func.func @_vision_fused_kernel(%arg0: memref<2x768xf32, #tpu.memory_space<vmem>>, %arg1: memref<768x1024xbf16, #tpu.memory_space<vmem>>, %arg2: memref<1024x512xbf16, #tpu.memory_space<vmem>>, %arg3: memref<2x512xf32, #tpu.memory_space<vmem>>) attributes {dimension_semantics = [], scalar_prefetch = 0 : i64, scratch_operands = 0 : i64, tpu.core_type = #tpu.core_type<tc>} {
    %c0 = arith.constant 0 : index
    %c0_0 = arith.constant 0 : index
    %0 = vector.load %arg0[%c0, %c0_0] : memref<2x768xf32, #tpu.memory_space<vmem>>, vector<2x768xf32>
    %1 = arith.truncf %0 : vector<2x768xf32> to vector<2x768xbf16>
    %c0_1 = arith.constant 0 : index
    %c0_2 = arith.constant 0 : index
    %2 = vector.load %arg1[%c0_1, %c0_2] : memref<768x1024xbf16, #tpu.memory_space<vmem>>, vector<768x1024xbf16>
    %cst = arith.constant dense<0.000000e+00> : vector<2x1024xf32>
    %3 = tpu.matmul %1, %2, %cst {dimension_numbers = #tpu.dot_dimension_numbers<[1], [0], [0], [1], [0, 0, 1, 1], [], []>} : vector<2x768xbf16>, vector<768x1024xbf16>, vector<2x1024xf32> -> vector<2x1024xf32>
    %4 = arith.mulf %3, %3 : vector<2x1024xf32>
    %cst_3 = arith.constant dense<0.000000e+00> : vector<2xf32>
    %5 = vector.multi_reduction <add>, %4, %cst_3 [1] : vector<2x1024xf32> to vector<2xf32>
    %6 = vector.shape_cast %5 : vector<2xf32> to vector<2x1xf32>
    %7 = math.rsqrt %6 : vector<2x1xf32>
    %8 = vector.broadcast %7 : vector<2x1xf32> to vector<2x1024xf32>
    %9 = arith.mulf %3, %8 : vector<2x1024xf32>
    %10 = arith.truncf %9 : vector<2x1024xf32> to vector<2x1024xbf16>
    %c0_4 = arith.constant 0 : index
    %c0_5 = arith.constant 0 : index
    %11 = vector.load %arg2[%c0_4, %c0_5] : memref<1024x512xbf16, #tpu.memory_space<vmem>>, vector<1024x512xbf16>
    %cst_6 = arith.constant dense<0.000000e+00> : vector<2x512xf32>
    %12 = tpu.matmul %10, %11, %cst_6 {dimension_numbers = #tpu.dot_dimension_numbers<[1], [0], [0], [1], [0, 0, 1, 1], [], []>} : vector<2x1024xbf16>, vector<1024x512xbf16>, vector<2x512xf32> -> vector<2x512xf32>
    %13 = arith.mulf %12, %12 : vector<2x512xf32>
    %cst_7 = arith.constant dense<0.000000e+00> : vector<2xf32>
    %14 = vector.multi_reduction <add>, %13, %cst_7 [1] : vector<2x512xf32> to vector<2xf32>
    %15 = vector.shape_cast %14 : vector<2xf32> to vector<2x1xf32>
    %16 = math.rsqrt %15 : vector<2x1xf32>
    %17 = vector.broadcast %16 : vector<2x1xf32> to vector<2x512xf32>
    %18 = arith.mulf %12, %17 : vector<2x512xf32>
    %c0_8 = arith.constant 0 : index
    %c0_9 = arith.constant 0 : index
    %19 = vector.load %arg3[%c0_8, %c0_9] : memref<2x512xf32, #tpu.memory_space<vmem>>, vector<2x512xf32>
    tpu.vector_store %arg3[%c0_8, %c0_9], %18 {strides = array<i32>} : memref<2x512xf32, #tpu.memory_space<vmem>>, vector<2x512xf32>,
    return
  }
}

</mosaic_0001>

<bundles_post_ra>
// kernel: tpu_custom_call.1
= control target key start
LH: loop header
LB: loop body
LE: loop exit
PB: predicated region body
PF: predicated region fallthrough
CT: control target
= control target key end

     0   :  { %8 = vsyncpa [#allocation3], 0  ;;  %s6241_s0 = inlined_call_operand.hbm [shape: f32[2,768], index: 0, kind: input, shape index: {}]   ;;  %s6242_s1 = inlined_call_operand.hbm [shape: bf16[768,1024], index: 1, kind: input, shape index: {}]   ;;  %s6243_s2 = inlined_call_operand.hbm [shape: bf16[1024,512], index: 2, kind: input, shape index: {}]   ;;  %s6244_s3 = inlined_call_operand.hbm [shape: f32[2,512], index: 3, kind: output, shape index: {}]  }
   0x1   :  { %9 = vsyncpa [#allocation6], 0 }
   0x2   :  { %10 = vsyncpa [#allocation4], 0  ;;  %s6044_s12 = smov [#allocation5]   ;;  %s5950_s16 = scalar_lea.hbm %s6242_s1, 49152 }
   0x3   :  { %s26_s13 = sshll.u32 %s6044_s12, 4  ;;  %p5951_p0 = scmp.ne.s32.totalorder %s6242_s1, %s5950_s16  ;;  %s27_s13 = int_to_ptr.vmem [resolvable:$true] %s26_s13 }
   0x4   :  { %p5954_p1 = scmp.lt.u32.totalorder %s5950_s16, %s6242_s1 }
   0x6   :  { %p5956_p2 = pnand %p5954_p1, %p5951_p0 }
   0x8   :  { %5959 = shalt.err (!%p5956_p2)
}
   0x9   :  { %s5960_s21 = scalar_lea.vmem %s27_s13, 49152  ;;  %p5965_p4 = scmp.lt.s32.totalorder %s27_s13, %s27_s13 }
   0xa   :  { %p5961_p3 = scmp.ne.s32.totalorder %s27_s13, %s5960_s21  ;;  %p5966_p5 = scmp.lt.s32.totalorder %s5960_s21, %s5960_s21 }
   0xc   :  { %p5967_p6 = por %p5966_p5, %p5965_p4 }
   0xe   :  { %p5968_p7 = pnand %p5967_p6, %p5961_p3 }
  0x10   :  { %5971 = shalt.err (!%p5968_p7)
}
  0x11   :  { %s6045_s22 = smov 512   ;;  %s6046_s23 = smov 32  }
  0x12   :  { %32 = dma.hbm_to_vmem [thread:$0]  %s6242_s1, 49152, %s27_s13, [#allocation6], %s6045_s22, %s6045_s22, %s6046_s23  }
  0x13   :  { %s6047_s26 = smov [#allocation2]   ;;  %s6048_s28 = smov [#allocation7]  }
  0x14   :  { %s17_s27 = sshll.u32 %s6047_s26, 4  ;;  %s38_s29 = sshll.u32 %s6048_s28, 4  ;;  %s18_s27 = int_to_ptr.vmem [resolvable:$true] %s17_s27  ;;  %s39_s29 = int_to_ptr.vmem [resolvable:$true] %s38_s29 }
  0x15   :  { %s5972_s5 = scalar_lea.hbm %s6241_s0, 192 }
  0x16   :  { %p5973_p8 = scmp.ne.s32.totalorder %s6241_s0, %s5972_s5  ;;  %p5976_p9 = scmp.lt.u32.totalorder %s5972_s5, %s6241_s0 }
  0x18   :  { %p5978_p10 = pnand %p5976_p9, %p5973_p8 }
  0x1a   :  { %5981 = shalt.err (!%p5978_p10)
}
  0x1b   :  { %s5982_s1 = scalar_lea.vmem %s18_s27, 192  ;;  %p5987_p12 = scmp.lt.s32.totalorder %s18_s27, %s18_s27 }
  0x1c   :  { %p5983_p11 = scmp.ne.s32.totalorder %s18_s27, %s5982_s1  ;;  %p5988_p13 = scmp.lt.s32.totalorder %s5982_s1, %s5982_s1 }
  0x1e   :  { %p5989_p0 = por %p5988_p13, %p5987_p12 }
  0x20   :  { %p5990_p1 = pnand %p5989_p0, %p5983_p11 }
  0x22   :  { %5993 = shalt.err (!%p5990_p1)
}
  0x23   :  { %20 = dma.hbm_to_vmem [thread:$0]  %s6241_s0, 192, %s18_s27, [#allocation3]  }
  0x24   :  { %s5994_s14 = scalar_lea.hbm %s6243_s2, 32768 }
  0x25   :  { %p5995_p2 = scmp.ne.s32.totalorder %s6243_s2, %s5994_s14  ;;  %p5998_p3 = scmp.lt.u32.totalorder %s5994_s14, %s6243_s2 }
  0x27   :  { %p6000_p4 = pnand %p5998_p3, %p5995_p2 }
  0x29   :  { %6003 = shalt.err (!%p6000_p4)
}
  0x2a   :  { %s6004_s19 = scalar_lea.vmem %s39_s29, 32768  ;;  %p6009_p6 = scmp.lt.s32.totalorder %s39_s29, %s39_s29 }
  0x2b   :  { %p6005_p5 = scmp.ne.s32.totalorder %s39_s29, %s6004_s19  ;;  %p6010_p7 = scmp.lt.s32.totalorder %s6004_s19, %s6004_s19 }
  0x2d   :  { %p6011_p8 = por %p6010_p7, %p6009_p6 }
  0x2f   :  { %p6012_p9 = pnand %p6011_p8, %p6005_p5 }
  0x31   :  { %6015 = shalt.err (!%p6012_p9)
}
  0x32   :  { %s6049_s0 = smov 256   ;;  %s6050_s20 = smov 16  }
  0x33   :  { %44 = dma.hbm_to_vmem [thread:$0]  %s6243_s2, 32768, %s39_s29, [#allocation6], %s6049_s0, %s6049_s0, %s6050_s20  }
  0x34   :  { %6038 = dma.done.wait [#allocation3], 192  }
  0x35   :  { %6039 = vsyncadd [#allocation3], 4294967104 }
  0x36   :  { %6040 = dma.done.wait [#allocation6], 81920  }
  0x37   :  { %6041 = vsyncadd [#allocation6], 4294885376  ;;  %v95_v0 = vld [vmem:[#allocation5] sm:$0xff]  ;;  %v96_v2 = vld [vmem:[#allocation5 + $0x8] sm:$0xff]  ;;  %v6051_v32 = vmov 1983009808   ;;  %v62_v34 = vlaneseq }
  0x38   :  { %v99_v1 = vld [vmem:[#allocation5 + $0x20] sm:$0xff]  ;;  %v100_v4 = vld [vmem:[#allocation5 + $0x28] sm:$0xff]  ;;  %v60_v33 = vunpack.c.l.s4 %v6051_v32  ;;  %v6111_v59 = vld [vmem:[#allocation2] sm:$0xff]  ;;  %vm2899_vm0 = vcmask 1041408   ;;  %s6052_s2 = smov [#allocation8]  }
  0x39   :  { %v4857_v3 = vcombine.high %v95_v0, %v99_v1  ;;  %v4856_v5 = vcombine.low %v95_v0, %v99_v1  ;;  %v103_v6 = vld [vmem:[#allocation5 + $0x40] sm:$0xff]  ;;  %v4859_v8 = vcombine.high %v96_v2, %v100_v4  ;;  %v4858_v9 = vcombine.low %v96_v2, %v100_v4  ;;  %v104_v11 = vld [vmem:[#allocation5 + $0x48] sm:$0xff]  ;;  %s4845_s23 = sshll.u32 %s6052_s2, 4  ;;  %s4846_s23 = int_to_ptr.vmem [resolvable:$true] %s4845_s23 }
  0x3a   :  { %v107_v7 = vld [vmem:[#allocation5 + $0x60] sm:$0xff]  ;;  %v108_v12 = vld [vmem:[#allocation5 + $0x68] sm:$0xff]  ;;  %v61_v43 = vunpack.c.0.s8 %v60_v33  ;;  %v63_v44 = vshrl.u32 %v62_v34, 7  ;;  %s6016_s24 = scalar_lea.vmem %s4846_s23, 128  ;;  %p6021_p11 = scmp.lt.s32.totalorder %s4846_s23, %s4846_s23 }
  0x3b   :  { %v4865_v10 = vcombine.high %v103_v6, %v107_v7  ;;  %v111_v13 = vld [vmem:[#allocation5 + $0x80] sm:$0xff]  ;;  %2399 = vmatprep.subr.bf16.mxu0 %v4857_v3  ;;  %v4867_v14 = vcombine.high %v104_v11, %v108_v12  ;;  %v112_v16 = vld [vmem:[#allocation5 + $0x88] sm:$0xff]  ;;  %2522 = vmatprep.subr.bf16.mxu1 %v4859_v8  ;;  %v4864_v18 = vcombine.low %v103_v6, %v107_v7  ;;  %p6017_p10 = scmp.ne.s32.totalorder %s4846_s23, %s6016_s24  ;;  %p6022_p12 = scmp.lt.s32.totalorder %s6016_s24, %s6016_s24 }
  0x3c   :  { %v115_v15 = vld [vmem:[#allocation5 + $0xa0] sm:$0xff]  ;;  %v116_v17 = vld [vmem:[#allocation5 + $0xa8] sm:$0xff]  ;;  %2400 = vmatpush1.bf16.msra.mxu0 %v4856_v5  ;;  %2523 = vmatpush1.bf16.msra.mxu1 %v4858_v9  ;;  %v4866_v19 = vcombine.low %v104_v11, %v108_v12  ;;  %v6109_v53 = vsub.s32 %v61_v43, %v63_v44 }
  0x3d   :  { %2401 = vmatprep.subr.bf16.mxu0 %v4865_v10  ;;  %v4873_v20 = vcombine.high %v111_v13, %v115_v15  ;;  %2524 = vmatprep.subr.bf16.mxu1 %v4867_v14  ;;  %v4875_v21 = vcombine.high %v112_v16, %v116_v17  ;;  %v119_v22 = vld [vmem:[#allocation5 + $0xc0] sm:$0xff]  ;;  %v120_v24 = vld [vmem:[#allocation5 + $0xc8] sm:$0xff]  ;;  %v4872_v26 = vcombine.low %v111_v13, %v115_v15  ;;  %p6023_p13 = por %p6022_p12, %p6021_p11 }
  0x3e   :  { %v123_v23 = vld [vmem:[#allocation5 + $0xe0] sm:$0xff]  ;;  %v124_v25 = vld [vmem:[#allocation5 + $0xe8] sm:$0xff]  ;;  %v4874_v27 = vcombine.low %v112_v16, %v116_v17  ;;  %v6115_v63 = vrot.slane %v6111_v59, %v6109_v53 }
  0x3f   :  { %v4881_v28 = vcombine.high %v119_v22, %v123_v23  ;;  %v4883_v29 = vcombine.high %v120_v24, %v124_v25  ;;  %v127_v30 = vld [vmem:[#allocation5 + $0x100] sm:$0xff]  ;;  %v128_v35 = vld [vmem:[#allocation5 + $0x108] sm:$0xff]  ;;  %v4880_v37 = vcombine.low %v119_v22, %v123_v23  ;;  %v4882_v38 = vcombine.low %v120_v24, %v124_v25  ;;  %p6024_p0 = pnand %p6023_p13, %p6017_p10 }
  0x40   :  { %2402 = vmatpush1.bf16.msra.mxu0 %v4864_v18  ;;  %2525 = vmatpush1.bf16.msra.mxu1 %v4866_v19  ;;  %v131_v31 = vld [vmem:[#allocation5 + $0x120] sm:$0xff]  ;;  %v132_v36 = vld [vmem:[#allocation5 + $0x128] sm:$0xff]  ;;  %v73_v3 = vcombine.high %v6115_v63, %v6115_v63 }
  0x41   :  { %2403 = vmatprep.subr.bf16.mxu0 %v4873_v20  ;;  %2526 = vmatprep.subr.bf16.mxu1 %v4875_v21  ;;  %v4889_v39 = vcombine.high %v127_v30, %v131_v31  ;;  %v4891_v40 = vcombine.high %v128_v35, %v132_v36  ;;  %v135_v41 = vld [vmem:[#allocation5 + $0x140] sm:$0xff]  ;;  %v136_v45 = vld [vmem:[#allocation5 + $0x148] sm:$0xff]  ;;  %v4888_v47 = vcombine.low %v127_v30, %v131_v31 }
  0x42   :  { %v139_v42 = vld [vmem:[#allocation5 + $0x160] sm:$0xff]  ;;  %v140_v46 = vld [vmem:[#allocation5 + $0x168] sm:$0xff]  ;;  %v4890_v48 = vcombine.low %v128_v35, %v132_v36  ;;  %v6119_v9 = vpack.c.bf16 %v73_v3, %v73_v3 }
  0x43   :  { %v4897_v49 = vcombine.high %v135_v41, %v139_v42  ;;  %v4899_v50 = vcombine.high %v136_v45, %v140_v46  ;;  %v143_v51 = vld [vmem:[#allocation5 + $0x180] sm:$0xff]  ;;  %v144_v54 = vld [vmem:[#allocation5 + $0x188] sm:$0xff]  ;;  %v4896_v56 = vcombine.low %v135_v41, %v139_v42  ;;  %v4898_v57 = vcombine.low %v136_v45, %v140_v46 }
  0x44   :  { %2404 = vmatpush1.bf16.msra.mxu0 %v4872_v26  ;;  %2527 = vmatpush1.bf16.msra.mxu1 %v4874_v27  ;;  %v147_v52 = vld [vmem:[#allocation5 + $0x1a0] sm:$0xff]  ;;  %v148_v55 = vld [vmem:[#allocation5 + $0x1a8] sm:$0xff] }
  0x45   :  { %2405 = vmatprep.subr.bf16.mxu0 %v4881_v28  ;;  %2528 = vmatprep.subr.bf16.mxu1 %v4883_v29  ;;  %v4905_v58 = vcombine.high %v143_v51, %v147_v52  ;;  %v4907_v60 = vcombine.high %v144_v54, %v148_v55  ;;  %v151_v61 = vld [vmem:[#allocation5 + $0x1c0] sm:$0xff]  ;;  %v152_v0 = vld [vmem:[#allocation5 + $0x1c8] sm:$0xff]  ;;  %v4904_v2 = vcombine.low %v143_v51, %v147_v52 }
  0x46   :  { %v155_v62 = vld [vmem:[#allocation5 + $0x1e0] sm:$0xff]  ;;  %v156_v1 = vld [vmem:[#allocation5 + $0x1e8] sm:$0xff]  ;;  %v4906_v4 = vcombine.low %v144_v54, %v148_v55  ;;  %2431 = vmatprep.mubr.bf16.mxu0 %v6119_v9  ;;  %2554 = vmatprep.mubr.bf16.mxu1 %v6119_v9 }
  0x47   :  { %v4913_v5 = vcombine.high %v151_v61, %v155_v62  ;;  %v4915_v6 = vcombine.high %v152_v0, %v156_v1  ;;  %v159_v7 = vld [vmem:[#allocation5 + $0x200] sm:$0xff]  ;;  %v160_v10 = vld [vmem:[#allocation5 + $0x208] sm:$0xff]  ;;  %v4912_v12 = vcombine.low %v151_v61, %v155_v62  ;;  %v4914_v13 = vcombine.low %v152_v0, %v156_v1 }
  0x48   :  { %2406 = vmatpush1.bf16.msra.mxu0 %v4880_v37  ;;  %2529 = vmatpush1.bf16.msra.mxu1 %v4882_v38  ;;  %v163_v8 = vld [vmem:[#allocation5 + $0x220] sm:$0xff]  ;;  %v164_v11 = vld [vmem:[#allocation5 + $0x228] sm:$0xff] }
  0x49   :  { %2407 = vmatprep.subr.bf16.mxu0 %v4889_v39  ;;  %2530 = vmatprep.subr.bf16.mxu1 %v4891_v40  ;;  %v4921_v14 = vcombine.high %v159_v7, %v163_v8  ;;  %v4923_v15 = vcombine.high %v160_v10, %v164_v11  ;;  %v167_v16 = vld [vmem:[#allocation5 + $0x240] sm:$0xff]  ;;  %v168_v18 = vld [vmem:[#allocation5 + $0x248] sm:$0xff]  ;;  %v4920_v20 = vcombine.low %v159_v7, %v163_v8 }
  0x4a   :  { %v171_v17 = vld [vmem:[#allocation5 + $0x260] sm:$0xff]  ;;  %v172_v19 = vld [vmem:[#allocation5 + $0x268] sm:$0xff]  ;;  %v4922_v21 = vcombine.low %v160_v10, %v164_v11 }
  0x4b   :  { %v4929_v22 = vcombine.high %v167_v16, %v171_v17  ;;  %v4931_v23 = vcombine.high %v168_v18, %v172_v19  ;;  %v175_v24 = vld [vmem:[#allocation5 + $0x280] sm:$0xff]  ;;  %v176_v26 = vld [vmem:[#allocation5 + $0x288] sm:$0xff]  ;;  %v4928_v28 = vcombine.low %v167_v16, %v171_v17  ;;  %v4930_v29 = vcombine.low %v168_v18, %v172_v19 }
  0x4c   :  { %2408 = vmatpush1.bf16.msra.mxu0 %v4888_v47  ;;  %2531 = vmatpush1.bf16.msra.mxu1 %v4890_v48  ;;  %v179_v25 = vld [vmem:[#allocation5 + $0x2a0] sm:$0xff]  ;;  %v180_v27 = vld [vmem:[#allocation5 + $0x2a8] sm:$0xff] }
  0x4d   :  { %2409 = vmatprep.subr.bf16.mxu0 %v4897_v49  ;;  %2532 = vmatprep.subr.bf16.mxu1 %v4899_v50  ;;  %v4937_v30 = vcombine.high %v175_v24, %v179_v25  ;;  %v4939_v31 = vcombine.high %v176_v26, %v180_v27  ;;  %v183_v32 = vld [vmem:[#allocation5 + $0x2c0] sm:$0xff]  ;;  %v184_v34 = vld [vmem:[#allocation5 + $0x2c8] sm:$0xff]  ;;  %v4936_v36 = vcombine.low %v175_v24, %v179_v25 }
  0x4e   :  { %v187_v33 = vld [vmem:[#allocation5 + $0x2e0] sm:$0xff]  ;;  %v188_v35 = vld [vmem:[#allocation5 + $0x2e8] sm:$0xff]  ;;  %v4938_v37 = vcombine.low %v176_v26, %v180_v27  ;;  %v6132_v24 = vpack.c.bf16 %v6115_v63, %v6115_v63 }
  0x4f   :  { %v4945_v38 = vcombine.high %v183_v32, %v187_v33  ;;  %v4947_v39 = vcombine.high %v184_v34, %v188_v35  ;;  %v191_v40 = vld [vmem:[#allocation5 + $0x300] sm:$0xff]  ;;  %v192_v42 = vld [vmem:[#allocation5 + $0x308] sm:$0xff]  ;;  %v4944_v44 = vcombine.low %v183_v32, %v187_v33  ;;  %v4946_v45 = vcombine.low %v184_v34, %v188_v35 }
  0x50   :  { %2410 = vmatpush1.bf16.msra.mxu0 %v4896_v56  ;;  %2533 = vmatpush1.bf16.msra.mxu1 %v4898_v57  ;;  %v195_v41 = vld [vmem:[#allocation5 + $0x320] sm:$0xff]  ;;  %v196_v43 = vld [vmem:[#allocation5 + $0x328] sm:$0xff] }
  0x51   :  { %2411 = vmatprep.subr.bf16.mxu0 %v4905_v58  ;;  %2534 = vmatprep.subr.bf16.mxu1 %v4907_v60  ;;  %v4953_v46 = vcombine.high %v191_v40, %v195_v41  ;;  %v4955_v47 = vcombine.high %v192_v42, %v196_v43  ;;  %v199_v48 = vld [vmem:[#allocation5 + $0x340] sm:$0xff]  ;;  %v200_v50 = vld [vmem:[#allocation5 + $0x348] sm:$0xff]  ;;  %v4952_v52 = vcombine.low %v191_v40, %v195_v41 }
  0x52   :  { %v203_v49 = vld [vmem:[#allocation5 + $0x360] sm:$0xff]  ;;  %v204_v51 = vld [vmem:[#allocation5 + $0x368] sm:$0xff]  ;;  %v4954_v54 = vcombine.low %v192_v42, %v196_v43 }
  0x53   :  { %v4961_v55 = vcombine.high %v199_v48, %v203_v49  ;;  %v4963_v56 = vcombine.high %v200_v50, %v204_v51  ;;  %v207_v57 = vld [vmem:[#allocation5 + $0x380] sm:$0xff]  ;;  %v208_v60 = vld [vmem:[#allocation5 + $0x388] sm:$0xff]  ;;  %v4960_v62 = vcombine.low %v199_v48, %v203_v49  ;;  %v4962_v0 = vcombine.low %v200_v50, %v204_v51 }
  0x54   :  { %2412 = vmatpush1.bf16.msra.mxu0 %v4904_v2  ;;  %2535 = vmatpush1.bf16.msra.mxu1 %v4906_v4  ;;  %v211_v58 = vld [vmem:[#allocation5 + $0x3a0] sm:$0xff]  ;;  %v212_v61 = vld [vmem:[#allocation5 + $0x3a8] sm:$0xff] }
  0x55   :  { %2413 = vmatprep.subr.bf16.mxu0 %v4913_v5  ;;  %2536 = vmatprep.subr.bf16.mxu1 %v4915_v6  ;;  %v4969_v1 = vcombine.high %v207_v57, %v211_v58  ;;  %v4971_v2 = vcombine.high %v208_v60, %v212_v61  ;;  %v215_v3 = vld [vmem:[#allocation5 + $0x3c0] sm:$0xff]  ;;  %v58_v5 = vcombine.high %v6111_v59, %v6111_v59  ;;  %v216_v6 = vld [vmem:[#allocation5 + $0x3c8] sm:$0xff] }
  0x56   :  { %v219_v4 = vld [vmem:[#allocation5 + $0x3e0] sm:$0xff]  ;;  %v220_v7 = vld [vmem:[#allocation5 + $0x3e8] sm:$0xff]  ;;  %v4968_v8 = vcombine.low %v207_v57, %v211_v58  ;;  %v4970_v10 = vcombine.low %v208_v60, %v212_v61 }
  0x57   :  { %v4977_v11 = vcombine.high %v215_v3, %v219_v4  ;;  %v224_v16 = vld [vmem:[#allocation5 + $0x408] sm:$0xff]  ;;  %v4976_v18 = vcombine.low %v215_v3, %v219_v4  ;;  %v4978_v59 = vcombine.low %v216_v6, %v220_v7 }
  0x58   :  { %2414 = vmatpush1.bf16.msra.mxu0 %v4912_v12  ;;  %2537 = vmatpush1.bf16.msra.mxu1 %v4914_v13  ;;  %v4979_v12 = vcombine.high %v216_v6, %v220_v7  ;;  %v223_v13 = vld [vmem:[#allocation5 + $0x400] sm:$0xff]  ;;  %v228_v17 = vld [vmem:[#allocation5 + $0x428] sm:$0xff] }
  0x59   :  { %2415 = vmatprep.subr.bf16.mxu0 %v4921_v14  ;;  %2538 = vmatprep.subr.bf16.mxu1 %v4923_v15  ;;  %v227_v14 = vld [vmem:[#allocation5 + $0x420] sm:$0xff]  ;;  %v6126_v15 = vrot.slane %v58_v5, %v6109_v53  ;;  %v232_v25 = vld [vmem:[#allocation5 + $0x448] sm:$0xff] }
  0x5a   :  { %v4985_v19 = vcombine.high %v223_v13, %v227_v14  ;;  %v236_v26 = vld [vmem:[#allocation5 + $0x468] sm:$0xff]  ;;  %v4984_v27 = vcombine.low %v223_v13, %v227_v14 }
  0x5b   :  { %v240_v32 = vld [vmem:[#allocation5 + $0x488] sm:$0xff]  ;;  %v4995_v33 = vcombine.high %v232_v25, %v236_v26 }
  0x5c   :  { %2416 = vmatpush1.bf16.msra.mxu0 %v4920_v20  ;;  %2539 = vmatpush1.bf16.msra.mxu1 %v4922_v21  ;;  %v4987_v20 = vcombine.high %v224_v16, %v228_v17  ;;  %v231_v21 = vld [vmem:[#allocation5 + $0x440] sm:$0xff]  ;;  %v244_v34 = vld [vmem:[#allocation5 + $0x4a8] sm:$0xff] }
  0x5d   :  { %2417 = vmatprep.subr.bf16.mxu0 %v4929_v22  ;;  %2540 = vmatprep.subr.bf16.mxu1 %v4931_v23  ;;  %v235_v22 = vld [vmem:[#allocation5 + $0x460] sm:$0xff]  ;;  %v74_v23 = vcombine.high %v6126_v15, %v6126_v15  ;;  %v248_v40 = vld [vmem:[#allocation5 + $0x4c8] sm:$0xff]  ;;  %v5003_v41 = vcombine.high %v240_v32, %v244_v34 }
  0x5e   :  { %v4992_v63 = vcombine.low %v231_v21, %v235_v22  ;;  %v252_v42 = vld [vmem:[#allocation5 + $0x4e8] sm:$0xff] }
  0x5f   :  { %v6134_v35 = vpack.c.bf16 %v74_v23, %v74_v23  ;;  %v256_v48 = vld [vmem:[#allocation5 + $0x508] sm:$0xff]  ;;  %v5011_v49 = vcombine.high %v248_v40, %v252_v42 }
  0x60   :  { %2418 = vmatpush1.bf16.msra.mxu0 %v4928_v28  ;;  %2541 = vmatpush1.bf16.msra.mxu1 %v4930_v29  ;;  %v4986_v28 = vcombine.low %v224_v16, %v228_v17  ;;  %v4993_v29 = vcombine.high %v231_v21, %v235_v22  ;;  %v260_v50 = vld [vmem:[#allocation5 + $0x528] sm:$0xff] }
  0x61   :  { %2419 = vmatprep.subr.bf16.mxu0 %v4937_v30  ;;  %2542 = vmatprep.subr.bf16.mxu1 %v4939_v31  ;;  %v239_v30 = vld [vmem:[#allocation5 + $0x480] sm:$0xff]  ;;  %v264_v57 = vld [vmem:[#allocation5 + $0x548] sm:$0xff]  ;;  %v5019_v58 = vcombine.high %v256_v48, %v260_v50 }
  0x62   :  { %v243_v31 = vld [vmem:[#allocation5 + $0x4a0] sm:$0xff]  ;;  %v268_v60 = vld [vmem:[#allocation5 + $0x568] sm:$0xff] }
  0x63   :  { %v5000_v43 = vcombine.low %v239_v30, %v243_v31  ;;  %v272_v3 = vld [vmem:[#allocation5 + $0x588] sm:$0xff]  ;;  %v5027_v4 = vcombine.high %v264_v57, %v268_v60  ;;  %v5026_v7 = vcombine.low %v264_v57, %v268_v60 }
  0x64   :  { %2420 = vmatpush1.bf16.msra.mxu0 %v4936_v36  ;;  %2543 = vmatpush1.bf16.msra.mxu1 %v4938_v37  ;;  %v4994_v36 = vcombine.low %v232_v25, %v236_v26  ;;  %v5001_v37 = vcombine.high %v239_v30, %v243_v31  ;;  %v276_v5 = vld [vmem:[#allocation5 + $0x5a8] sm:$0xff] }
  0x65   :  { %2421 = vmatprep.subr.bf16.mxu0 %v4945_v38  ;;  %2544 = vmatprep.subr.bf16.mxu1 %v4947_v39  ;;  %v247_v38 = vld [vmem:[#allocation5 + $0x4c0] sm:$0xff]  ;;  %v5035_v13 = vcombine.high %v272_v3, %v276_v5  ;;  %v284_v14 = vld [vmem:[#allocation5 + $0x5e8] sm:$0xff]  ;;  %v5034_v17 = vcombine.low %v272_v3, %v276_v5 }
  0x66   :  { %v251_v39 = vld [vmem:[#allocation5 + $0x4e0] sm:$0xff]  ;;  %v292_v22 = vld [vmem:[#allocation5 + $0x628] sm:$0xff] }
  0x67   :  { %v5008_v51 = vcombine.low %v247_v38, %v251_v39  ;;  %v300_v31 = vld [vmem:[#allocation5 + $0x668] sm:$0xff] }
  0x68   :  { %2422 = vmatpush1.bf16.msra.mxu0 %v4944_v44  ;;  %2545 = vmatpush1.bf16.msra.mxu1 %v4946_v45  ;;  %v5002_v44 = vcombine.low %v240_v32, %v244_v34  ;;  %v5009_v45 = vcombine.high %v247_v38, %v251_v39  ;;  %v308_v39 = vld [vmem:[#allocation5 + $0x6a8] sm:$0xff] }
  0x69   :  { %2423 = vmatprep.subr.bf16.mxu0 %v4953_v46  ;;  %2546 = vmatprep.subr.bf16.mxu1 %v4955_v47  ;;  %v255_v46 = vld [vmem:[#allocation5 + $0x500] sm:$0xff] }
  0x6a   :  { %v259_v47 = vld [vmem:[#allocation5 + $0x520] sm:$0xff] }
  0x6b   :  { %v5016_v61 = vcombine.low %v255_v46, %v259_v47 }
  0x6c   :  { %2424 = vmatpush1.bf16.msra.mxu0 %v4952_v52  ;;  %2547 = vmatpush1.bf16.msra.mxu1 %v4954_v54  ;;  %v5010_v52 = vcombine.low %v248_v40, %v252_v42  ;;  %v5017_v54 = vcombine.high %v255_v46, %v259_v47  ;;  %v316_v47 = vld [vmem:[#allocation5 + $0x6e8] sm:$0xff] }
  0x6d   :  { %2425 = vmatprep.subr.bf16.mxu0 %v4961_v55  ;;  %2548 = vmatprep.subr.bf16.mxu1 %v4963_v56  ;;  %v263_v55 = vld [vmem:[#allocation5 + $0x540] sm:$0xff] }
  0x6e   :  { %v267_v56 = vld [vmem:[#allocation5 + $0x560] sm:$0xff] }
  0x6f   :  { %v5024_v6 = vcombine.low %v263_v55, %v267_v56 }
  0x70   :  { %2426 = vmatpush1.bf16.msra.mxu0 %v4960_v62  ;;  %2549 = vmatpush1.bf16.msra.mxu1 %v4962_v0  ;;  %v5018_v62 = vcombine.low %v256_v48, %v260_v50  ;;  %v5025_v0 = vcombine.high %v263_v55, %v267_v56  ;;  %v324_v56 = vld [vmem:[#allocation5 + $0x728] sm:$0xff] }
  0x71   :  { %2427 = vmatprep.subr.bf16.mxu0 %v4969_v1  ;;  %2550 = vmatprep.subr.bf16.mxu1 %v4971_v2  ;;  %v271_v1 = vld [vmem:[#allocation5 + $0x580] sm:$0xff] }
  0x72   :  { %v275_v2 = vld [vmem:[#allocation5 + $0x5a0] sm:$0xff] }
  0x73   :  { %v5032_v16 = vcombine.low %v271_v1, %v275_v2 }
  0x74   :  { %2428 = vmatpush1.bf16.msra.mxu0 %v4968_v8  ;;  %2551 = vmatpush1.bf16.msra.mxu1 %v4970_v10  ;;  %v5033_v8 = vcombine.high %v271_v1, %v275_v2  ;;  %v279_v10 = vld [vmem:[#allocation5 + $0x5c0] sm:$0xff]  ;;  %v332_v2 = vld [vmem:[#allocation5 + $0x768] sm:$0xff] }
  0x75   :  { %2429 = vmatprep.subr.bf16.mxu0 %v4977_v11  ;;  %2552 = vmatprep.subr.bf16.mxu1 %v4979_v12  ;;  %v283_v11 = vld [vmem:[#allocation5 + $0x5e0] sm:$0xff]  ;;  %v280_v12 = vld [vmem:[#allocation5 + $0x5c8] sm:$0xff] }
  0x76   :  { %v5043_v21 = vcombine.high %v280_v12, %v284_v14  ;;  %v5040_v23 = vcombine.low %v279_v10, %v283_v11  ;;  %v5042_v25 = vcombine.low %v280_v12, %v284_v14 }
  0x78   :  { %2430 = vmatpush1.bf16.msra.mxu0 %v4976_v18  ;;  %2553 = vmatpush1.bf16.msra.mxu1 %v4978_v59  ;;  %v5041_v18 = vcombine.high %v279_v10, %v283_v11  ;;  %v287_v59 = vld [vmem:[#allocation5 + $0x600] sm:$0xff]  ;;  %v340_v11 = vld [vmem:[#allocation5 + $0x7a8] sm:$0xff] }
  0x79   :  { %2440 = vmatprep.subr.bf16.mxu0 %v4985_v19  ;;  %2563 = vmatprep.subr.bf16.mxu1 %v4987_v20  ;;  %v291_v19 = vld [vmem:[#allocation5 + $0x620] sm:$0xff]  ;;  %v288_v20 = vld [vmem:[#allocation5 + $0x608] sm:$0xff] }
  0x7a   :  { %v5049_v26 = vcombine.high %v287_v59, %v291_v19  ;;  %v5051_v30 = vcombine.high %v288_v20, %v292_v22  ;;  %v5048_v32 = vcombine.low %v287_v59, %v291_v19  ;;  %v348_v19 = vld [vmem:[#allocation5 + $0x7e8] sm:$0xff] }
  0x7b   :  { %2432 = vmatmul.mubr.bf16.vlgmr.msra.gmra.mrb[0].mxu0 %v6132_v24  ;;  %2555 = vmatmul.mubr.bf16.vlgmr.msra.gmra.mrb[0].mxu1 %v6132_v24 }
  0x7c   :  { %2441 = vmatpush1.bf16.msra.mxu0 %v4984_v27  ;;  %2564 = vmatpush1.bf16.msra.mxu1 %v4986_v28  ;;  %v295_v27 = vld [vmem:[#allocation5 + $0x640] sm:$0xff] }
  0x7d   :  { %2442 = vmatprep.subr.bf16.mxu0 %v4993_v29  ;;  %2565 = vmatprep.subr.bf16.mxu1 %v4995_v33  ;;  %v299_v28 = vld [vmem:[#allocation5 + $0x660] sm:$0xff]  ;;  %v296_v29 = vld [vmem:[#allocation5 + $0x648] sm:$0xff]  ;;  %v5050_v33 = vcombine.low %v288_v20, %v292_v22 }
  0x7e   :  { %2472 = vmatprep.mubr.bf16.mxu0 %v6134_v35  ;;  %2595 = vmatprep.mubr.bf16.mxu1 %v6134_v35  ;;  %v5057_v34 = vcombine.high %v295_v27, %v299_v28  ;;  %v5059_v38 = vcombine.high %v296_v29, %v300_v31  ;;  %v5056_v40 = vcombine.low %v295_v27, %v299_v28  ;;  %v356_v27 = vld [vmem:[#allocation5 + $0x828] sm:$0xff] }
  0x80   :  { %2443 = vmatpush1.bf16.msra.mxu0 %v4992_v63  ;;  %2566 = vmatpush1.bf16.msra.mxu1 %v4994_v36  ;;  %v303_v63 = vld [vmem:[#allocation5 + $0x680] sm:$0xff] }
  0x81   :  { %2444 = vmatprep.subr.bf16.mxu0 %v5001_v37  ;;  %2567 = vmatprep.subr.bf16.mxu1 %v5003_v41  ;;  %v307_v36 = vld [vmem:[#allocation5 + $0x6a0] sm:$0xff]  ;;  %v304_v37 = vld [vmem:[#allocation5 + $0x688] sm:$0xff]  ;;  %v5058_v41 = vcombine.low %v296_v29, %v300_v31  ;;  %v6140_v29 = vld.sshfl [vmem:[#allocation2 + $0x8] sm:$0x33 pattern:$0x76325410] }
  0x82   :  { %v5065_v42 = vcombine.high %v303_v63, %v307_v36  ;;  %v5067_v46 = vcombine.high %v304_v37, %v308_v39  ;;  %v5064_v48 = vcombine.low %v303_v63, %v307_v36  ;;  %v360_v63 = vld [vmem:[#allocation5 + $0x848] sm:$0xff] }
  0x84   :  { %2445 = vmatpush1.bf16.msra.mxu0 %v5000_v43  ;;  %2568 = vmatpush1.bf16.msra.mxu1 %v5002_v44  ;;  %v311_v43 = vld [vmem:[#allocation5 + $0x6c0] sm:$0xff] }
  0x85   :  { %2446 = vmatprep.subr.bf16.mxu0 %v5009_v45  ;;  %2569 = vmatprep.subr.bf16.mxu1 %v5011_v49  ;;  %v315_v44 = vld [vmem:[#allocation5 + $0x6e0] sm:$0xff]  ;;  %v312_v45 = vld [vmem:[#allocation5 + $0x6c8] sm:$0xff]  ;;  %v5066_v49 = vcombine.low %v304_v37, %v308_v39  ;;  %v6146_v39 = vpack.c.bf16 %v6126_v15, %v6126_v15 }
  0x86   :  { %v5073_v50 = vcombine.high %v311_v43, %v315_v44  ;;  %v5075_v55 = vcombine.high %v312_v45, %v316_v47  ;;  %v5072_v57 = vcombine.low %v311_v43, %v315_v44  ;;  %v364_v37 = vld [vmem:[#allocation5 + $0x868] sm:$0xff]  ;;  %v367_v43 = vld [vmem:[#allocation5 + $0x880] sm:$0xff] }
  0x87   :  { %v371_v44 = vld [vmem:[#allocation5 + $0x8a0] sm:$0xff] }
  0x88   :  { %2447 = vmatpush1.bf16.msra.mxu0 %v5008_v51  ;;  %2570 = vmatpush1.bf16.msra.mxu1 %v5010_v52  ;;  %v319_v51 = vld [vmem:[#allocation5 + $0x700] sm:$0xff] }
  0x89   :  { %2448 = vmatprep.subr.bf16.mxu0 %v5017_v54  ;;  %2571 = vmatprep.subr.bf16.mxu1 %v5019_v58  ;;  %v323_v52 = vld [vmem:[#allocation5 + $0x720] sm:$0xff]  ;;  %v320_v54 = vld [vmem:[#allocation5 + $0x708] sm:$0xff]  ;;  %v5074_v58 = vcombine.low %v312_v45, %v316_v47 }
  0x8a   :  { %v5081_v60 = vcombine.high %v319_v51, %v323_v52  ;;  %v5083_v1 = vcombine.high %v320_v54, %v324_v56  ;;  %v5080_v3 = vcombine.low %v319_v51, %v323_v52  ;;  %v368_v45 = vld [vmem:[#allocation5 + $0x888] sm:$0xff]  ;;  %v375_v51 = vld [vmem:[#allocation5 + $0x8c0] sm:$0xff] }
  0x8b   :  { %v372_v47 = vld [vmem:[#allocation5 + $0x8a8] sm:$0xff]  ;;  %v379_v52 = vld [vmem:[#allocation5 + $0x8e0] sm:$0xff] }
  0x8c   :  { %2449 = vmatpush1.bf16.msra.mxu0 %v5016_v61  ;;  %2572 = vmatpush1.bf16.msra.mxu1 %v5018_v62  ;;  %v327_v61 = vld [vmem:[#allocation5 + $0x740] sm:$0xff] }
  0x8d   :  { %2450 = vmatprep.subr.bf16.mxu0 %v5025_v0  ;;  %2573 = vmatprep.subr.bf16.mxu1 %v5027_v4  ;;  %v331_v62 = vld [vmem:[#allocation5 + $0x760] sm:$0xff]  ;;  %v328_v0 = vld [vmem:[#allocation5 + $0x748] sm:$0xff]  ;;  %v5082_v4 = vcombine.low %v320_v54, %v324_v56 }
  0x8e   :  { %v5089_v5 = vcombine.high %v327_v61, %v331_v62  ;;  %v5091_v10 = vcombine.high %v328_v0, %v332_v2  ;;  %v5088_v12 = vcombine.low %v327_v61, %v331_v62  ;;  %v376_v54 = vld [vmem:[#allocation5 + $0x8c8] sm:$0xff]  ;;  %v383_v61 = vld [vmem:[#allocation5 + $0x900] sm:$0xff] }
  0x8f   :  { %v380_v56 = vld [vmem:[#allocation5 + $0x8e8] sm:$0xff]  ;;  %v387_v62 = vld [vmem:[#allocation5 + $0x920] sm:$0xff] }
  0x90   :  { %2451 = vmatpush1.bf16.msra.mxu0 %v5024_v6  ;;  %2574 = vmatpush1.bf16.msra.mxu1 %v5026_v7  ;;  %v335_v6 = vld [vmem:[#allocation5 + $0x780] sm:$0xff] }
  0x91   :  { %2452 = vmatprep.subr.bf16.mxu0 %v5033_v8  ;;  %2575 = vmatprep.subr.bf16.mxu1 %v5035_v13  ;;  %v339_v7 = vld [vmem:[#allocation5 + $0x7a0] sm:$0xff]  ;;  %v336_v8 = vld [vmem:[#allocation5 + $0x788] sm:$0xff]  ;;  %v5090_v13 = vcombine.low %v328_v0, %v332_v2 }
  0x92   :  { %v5097_v14 = vcombine.high %v335_v6, %v339_v7  ;;  %v5099_v59 = vcombine.high %v336_v8, %v340_v11  ;;  %v5096_v20 = vcombine.low %v335_v6, %v339_v7  ;;  %v5098_v22 = vcombine.low %v336_v8, %v340_v11  ;;  %v384_v0 = vld [vmem:[#allocation5 + $0x908] sm:$0xff]  ;;  %v391_v6 = vld [vmem:[#allocation5 + $0x940] sm:$0xff] }
  0x93   :  { %v388_v2 = vld [vmem:[#allocation5 + $0x928] sm:$0xff]  ;;  %v395_v7 = vld [vmem:[#allocation5 + $0x960] sm:$0xff] }
  0x94   :  { %2453 = vmatpush1.bf16.msra.mxu0 %v5032_v16  ;;  %2576 = vmatpush1.bf16.msra.mxu1 %v5034_v17  ;;  %v343_v16 = vld [vmem:[#allocation5 + $0x7c0] sm:$0xff]  ;;  %v392_v8 = vld [vmem:[#allocation5 + $0x948] sm:$0xff] }
  0x95   :  { %2454 = vmatprep.subr.bf16.mxu0 %v5041_v18  ;;  %2577 = vmatprep.subr.bf16.mxu1 %v5043_v21  ;;  %v347_v17 = vld [vmem:[#allocation5 + $0x7e0] sm:$0xff]  ;;  %v344_v18 = vld [vmem:[#allocation5 + $0x7c8] sm:$0xff] }
  0x96   :  { %v351_v21 = vld [vmem:[#allocation5 + $0x800] sm:$0xff]  ;;  %v5107_v28 = vcombine.high %v344_v18, %v348_v19  ;;  %v5106_v31 = vcombine.low %v344_v18, %v348_v19  ;;  %v396_v11 = vld [vmem:[#allocation5 + $0x968] sm:$0xff] }
  0x97   :  { %v400_v18 = vld [vmem:[#allocation5 + $0x988] sm:$0xff] }
  0x98   :  { %2455 = vmatpush1.bf16.msra.mxu0 %v5040_v23  ;;  %2578 = vmatpush1.bf16.msra.mxu1 %v5042_v25  ;;  %v5105_v23 = vcombine.high %v343_v16, %v347_v17  ;;  %v355_v25 = vld [vmem:[#allocation5 + $0x820] sm:$0xff]  ;;  %v404_v19 = vld [vmem:[#allocation5 + $0x9a8] sm:$0xff] }
  0x99   :  { %2456 = vmatprep.subr.bf16.mxu0 %v5049_v26  ;;  %2579 = vmatprep.subr.bf16.mxu1 %v5051_v30  ;;  %v352_v26 = vld [vmem:[#allocation5 + $0x808] sm:$0xff]  ;;  %v5104_v30 = vcombine.low %v343_v16, %v347_v17  ;;  %v399_v16 = vld [vmem:[#allocation5 + $0x980] sm:$0xff] }
  0x9a   :  { %v5115_v36 = vcombine.high %v352_v26, %v356_v27  ;;  %v403_v17 = vld [vmem:[#allocation5 + $0x9a0] sm:$0xff] }
  0x9c   :  { %2457 = vmatpush1.bf16.msra.mxu0 %v5048_v32  ;;  %2580 = vmatpush1.bf16.msra.mxu1 %v5050_v33  ;;  %v5113_v32 = vcombine.high %v351_v21, %v355_v25  ;;  %v359_v33 = vld [vmem:[#allocation5 + $0x840] sm:$0xff] }
  0x9d   :  { %2458 = vmatprep.subr.bf16.mxu0 %v5057_v34  ;;  %2581 = vmatprep.subr.bf16.mxu1 %v5059_v38  ;;  %v363_v34 = vld [vmem:[#allocation5 + $0x860] sm:$0xff]  ;;  %v82_v38 = vcombine.high %v6140_v29, %v6140_v29 }
  0x9e   :  { %v5120_v15 = vcombine.low %v359_v33, %v363_v34 }
  0xa0   :  { %2459 = vmatpush1.bf16.msra.mxu0 %v5056_v40  ;;  %2582 = vmatpush1.bf16.msra.mxu1 %v5058_v41  ;;  %v5112_v40 = vcombine.low %v351_v21, %v355_v25  ;;  %v5114_v41 = vcombine.low %v352_v26, %v356_v27  ;;  %v5154_v21 = vcombine.low %v392_v8, %v396_v11  ;;  %v411_v25 = vld [vmem:[#allocation5 + $0x9e0] sm:$0xff]  ;;  %v408_v26 = vld [vmem:[#allocation5 + $0x9c8] sm:$0xff] }
  0xa1   :  { %2460 = vmatprep.subr.bf16.mxu0 %v5065_v42  ;;  %2583 = vmatprep.subr.bf16.mxu1 %v5067_v46  ;;  %v5121_v42 = vcombine.high %v359_v33, %v363_v34  ;;  %v5123_v46 = vcombine.high %v360_v63, %v364_v37  ;;  %v5163_v27 = vcombine.high %v400_v18, %v404_v19  ;;  %v415_v33 = vld [vmem:[#allocation5 + $0xa00] sm:$0xff] }
  0xa2   :  { %v419_v34 = vld [vmem:[#allocation5 + $0xa20] sm:$0xff] }
  0xa4   :  { %2461 = vmatpush1.bf16.msra.mxu0 %v5064_v48  ;;  %2584 = vmatpush1.bf16.msra.mxu1 %v5066_v49  ;;  %v6148_v48 = vpack.c.bf16 %v82_v38, %v82_v38  ;;  %v5122_v49 = vcombine.low %v360_v63, %v364_v37  ;;  %v416_v63 = vld [vmem:[#allocation5 + $0xa08] sm:$0xff] }
  0xa5   :  { %2462 = vmatprep.subr.bf16.mxu0 %v5073_v50  ;;  %2585 = vmatprep.subr.bf16.mxu1 %v5075_v55  ;;  %v5129_v50 = vcombine.high %v367_v43, %v371_v44  ;;  %v5131_v55 = vcombine.high %v368_v45, %v372_v47  ;;  %v420_v37 = vld [vmem:[#allocation5 + $0xa28] sm:$0xff] }
  0xa8   :  { %2463 = vmatpush1.bf16.msra.mxu0 %v5072_v57  ;;  %2586 = vmatpush1.bf16.msra.mxu1 %v5074_v58  ;;  %v5128_v57 = vcombine.low %v367_v43, %v371_v44  ;;  %v5130_v58 = vcombine.low %v368_v45, %v372_v47  ;;  %v427_v43 = vld [vmem:[#allocation5 + $0xa60] sm:$0xff]  ;;  %v424_v44 = vld [vmem:[#allocation5 + $0xa48] sm:$0xff]  ;;  %v5179_v45 = vcombine.high %v416_v63, %v420_v37 }
  0xa9   :  { %2464 = vmatprep.subr.bf16.mxu0 %v5081_v60  ;;  %2587 = vmatprep.subr.bf16.mxu1 %v5083_v1  ;;  %v5137_v60 = vcombine.high %v375_v51, %v379_v52  ;;  %v5139_v1 = vcombine.high %v376_v54, %v380_v56  ;;  %v5176_v47 = vcombine.low %v415_v33, %v419_v34 }
  0xac   :  { %2465 = vmatpush1.bf16.msra.mxu0 %v5080_v3  ;;  %2588 = vmatpush1.bf16.msra.mxu1 %v5082_v4  ;;  %v5136_v3 = vcombine.low %v375_v51, %v379_v52  ;;  %v5138_v4 = vcombine.low %v376_v54, %v380_v56  ;;  %v435_v51 = vld [vmem:[#allocation5 + $0xaa0] sm:$0xff]  ;;  %v432_v52 = vld [vmem:[#allocation5 + $0xa88] sm:$0xff] }
  0xad   :  { %2466 = vmatprep.subr.bf16.mxu0 %v5089_v5  ;;  %2589 = vmatprep.subr.bf16.mxu1 %v5091_v10  ;;  %v5145_v5 = vcombine.high %v383_v61, %v387_v62  ;;  %v5147_v10 = vcombine.high %v384_v0, %v388_v2 }
  0xb0   :  { %2467 = vmatpush1.bf16.msra.mxu0 %v5088_v12  ;;  %2590 = vmatpush1.bf16.msra.mxu1 %v5090_v13  ;;  %v5144_v12 = vcombine.low %v383_v61, %v387_v62  ;;  %v5146_v13 = vcombine.low %v384_v0, %v388_v2  ;;  %v443_v61 = vld [vmem:[#allocation5 + $0xae0] sm:$0xff]  ;;  %v440_v62 = vld [vmem:[#allocation5 + $0xac8] sm:$0xff] }
  0xb1   :  { %2468 = vmatprep.subr.bf16.mxu0 %v5097_v14  ;;  %2591 = vmatprep.subr.bf16.mxu1 %v5099_v59  ;;  %v5153_v14 = vcombine.high %v391_v6, %v395_v7  ;;  %v5155_v59 = vcombine.high %v392_v8, %v396_v11 }
  0xb4   :  { %2469 = vmatpush1.bf16.msra.mxu0 %v5096_v20  ;;  %2592 = vmatpush1.bf16.msra.mxu1 %v5098_v22  ;;  %v5152_v20 = vcombine.low %v391_v6, %v395_v7  ;;  %v5161_v22 = vcombine.high %v399_v16, %v403_v17  ;;  %v451_v6 = vld [vmem:[#allocation5 + $0xb20] sm:$0xff]  ;;  %v448_v7 = vld [vmem:[#allocation5 + $0xb08] sm:$0xff] }
  0xb5   :  { %2470 = vmatprep.subr.bf16.mxu0 %v5105_v23  ;;  %2593 = vmatprep.subr.bf16.mxu1 %v5107_v28  ;;  %v407_v23 = vld [vmem:[#allocation5 + $0x9c0] sm:$0xff]  ;;  %v412_v28 = vld [vmem:[#allocation5 + $0x9e8] sm:$0xff] }
  0xb6   :  { %v5168_v38 = vcombine.low %v407_v23, %v411_v25 }
  0xb8   :  { %2471 = vmatpush1.bf16.msra.mxu0 %v5104_v30  ;;  %2594 = vmatpush1.bf16.msra.mxu1 %v5106_v31  ;;  %v5160_v30 = vcombine.low %v399_v16, %v403_v17  ;;  %v5162_v31 = vcombine.low %v400_v18, %v404_v19  ;;  %v459_v16 = vld [vmem:[#allocation5 + $0xb60] sm:$0xff]  ;;  %v456_v17 = vld [vmem:[#allocation5 + $0xb48] sm:$0xff] }
  0xb9   :  { %2481 = vmatprep.subr.bf16.mxu0 %v5113_v32  ;;  %2604 = vmatprep.subr.bf16.mxu1 %v5115_v36  ;;  %v5169_v32 = vcombine.high %v407_v23, %v411_v25  ;;  %v5171_v36 = vcombine.high %v408_v26, %v412_v28  ;;  %v467_v23 = vld [vmem:[#allocation5 + $0xba0] sm:$0xff]  ;;  %v464_v25 = vld [vmem:[#allocation5 + $0xb88] sm:$0xff] }
  0xbb   :  { %2473 = vmatmul.mubr.bf16.vlgmr.msra.gmra.mrb[0].mxu0 %v6146_v39  ;;  %2596 = vmatmul.mubr.bf16.vlgmr.msra.gmra.mrb[0].mxu1 %v6146_v39 }
  0xbc   :  { %2482 = vmatpush1.bf16.msra.mxu0 %v5112_v40  ;;  %2605 = vmatpush1.bf16.msra.mxu1 %v5114_v41  ;;  %v5170_v40 = vcombine.low %v408_v26, %v412_v28  ;;  %v5177_v41 = vcombine.high %v415_v33, %v419_v34  ;;  %v475_v33 = vld [vmem:[#allocation5 + $0xbe0] sm:$0xff]  ;;  %v472_v34 = vld [vmem:[#allocation5 + $0xbc8] sm:$0xff] }
  0xbd   :  { %2483 = vmatprep.subr.bf16.mxu0 %v5121_v42  ;;  %2606 = vmatprep.subr.bf16.mxu1 %v5123_v46  ;;  %v423_v42 = vld [vmem:[#allocation5 + $0xa40] sm:$0xff]  ;;  %v428_v46 = vld [vmem:[#allocation5 + $0xa68] sm:$0xff] }
  0xbe   :  { %2513 = vmatprep.mubr.bf16.mxu0 %v6148_v48  ;;  %2636 = vmatprep.mubr.bf16.mxu1 %v6148_v48  ;;  %v5187_v54 = vcombine.high %v424_v44, %v428_v46  ;;  %v5184_v56 = vcombine.low %v423_v42, %v427_v43 }
  0xc0   :  { %2484 = vmatpush1.bf16.msra.mxu0 %v5120_v15  ;;  %2607 = vmatpush1.bf16.msra.mxu1 %v5122_v49  ;;  %v5178_v15 = vcombine.low %v416_v63, %v420_v37  ;;  %v5185_v49 = vcombine.high %v423_v42, %v427_v43  ;;  %v101_v42 = vld [vmem:[#allocation5 + $0x30] sm:$0xff]  ;;  %v98_v43 = vld [vmem:[#allocation5 + $0x18] sm:$0xff] }
  0xc1   :  { %2485 = vmatprep.subr.bf16.mxu0 %v5129_v50  ;;  %2608 = vmatprep.subr.bf16.mxu1 %v5131_v55  ;;  %v431_v50 = vld [vmem:[#allocation5 + $0xa80] sm:$0xff]  ;;  %v436_v55 = vld [vmem:[#allocation5 + $0xaa8] sm:$0xff] }
  0xc2   :  { %v5195_v0 = vcombine.high %v432_v52, %v436_v55  ;;  %v5192_v2 = vcombine.low %v431_v50, %v435_v51 }
  0xc4   :  { %2486 = vmatpush1.bf16.msra.mxu0 %v5128_v57  ;;  %2609 = vmatpush1.bf16.msra.mxu1 %v5130_v58  ;;  %v5186_v57 = vcombine.low %v424_v44, %v428_v46  ;;  %v5193_v58 = vcombine.high %v431_v50, %v435_v51  ;;  %v109_v50 = vld [vmem:[#allocation5 + $0x70] sm:$0xff]  ;;  %v106_v51 = vld [vmem:[#allocation5 + $0x58] sm:$0xff] }
  0xc5   :  { %2487 = vmatprep.subr.bf16.mxu0 %v5137_v60  ;;  %2610 = vmatprep.subr.bf16.mxu1 %v5139_v1  ;;  %v439_v60 = vld [vmem:[#allocation5 + $0xac0] sm:$0xff]  ;;  %v444_v1 = vld [vmem:[#allocation5 + $0xae8] sm:$0xff] }
  0xc6   :  { %v5203_v8 = vcombine.high %v440_v62, %v444_v1  ;;  %v5200_v11 = vcombine.low %v439_v60, %v443_v61 }
  0xc8   :  { %2488 = vmatpush1.bf16.msra.mxu0 %v5136_v3  ;;  %2611 = vmatpush1.bf16.msra.mxu1 %v5138_v4  ;;  %v5194_v3 = vcombine.low %v432_v52, %v436_v55  ;;  %v5201_v4 = vcombine.high %v439_v60, %v443_v61  ;;  %v6156_v55 = vpack.c.bf16 %v6140_v29, %v6140_v29  ;;  %v113_v61 = vld [vmem:[#allocation5 + $0x90] sm:$0xff] }
  0xc9   :  { %2489 = vmatprep.subr.bf16.mxu0 %v5145_v5  ;;  %2612 = vmatprep.subr.bf16.mxu1 %v5147_v10  ;;  %v447_v5 = vld [vmem:[#allocation5 + $0xb00] sm:$0xff]  ;;  %v452_v10 = vld [vmem:[#allocation5 + $0xb28] sm:$0xff] }
  0xca   :  { %v5211_v18 = vcombine.high %v448_v7, %v452_v10  ;;  %v5208_v19 = vcombine.low %v447_v5, %v451_v6 }
  0xcc   :  { %2490 = vmatpush1.bf16.msra.mxu0 %v5144_v12  ;;  %2613 = vmatpush1.bf16.msra.mxu1 %v5146_v13  ;;  %v5202_v12 = vcombine.low %v440_v62, %v444_v1  ;;  %v5209_v13 = vcombine.high %v447_v5, %v451_v6  ;;  %v117_v62 = vld [vmem:[#allocation5 + $0xb0] sm:$0xff]  ;;  %v118_v1 = vld [vmem:[#allocation5 + $0xb8] sm:$0xff] }
  0xcd   :  { %2491 = vmatprep.subr.bf16.mxu0 %v5153_v14  ;;  %2614 = vmatprep.subr.bf16.mxu1 %v5155_v59  ;;  %v455_v14 = vld [vmem:[#allocation5 + $0xb40] sm:$0xff]  ;;  %v460_v59 = vld [vmem:[#allocation5 + $0xb68] sm:$0xff]  ;;  %v121_v5 = vld [vmem:[#allocation5 + $0xd0] sm:$0xff] }
  0xce   :  { %v5219_v26 = vcombine.high %v456_v17, %v460_v59  ;;  %v5216_v28 = vcombine.low %v455_v14, %v459_v16  ;;  %v125_v6 = vld [vmem:[#allocation5 + $0xf0] sm:$0xff] }
  0xd0   :  { %2492 = vmatpush1.bf16.msra.mxu0 %v5152_v20  ;;  %2615 = vmatpush1.bf16.msra.mxu1 %v5154_v21  ;;  %v5210_v20 = vcombine.low %v448_v7, %v452_v10  ;;  %v5217_v21 = vcombine.high %v455_v14, %v459_v16  ;;  %v122_v7 = vld [vmem:[#allocation5 + $0xd8] sm:$0xff]  ;;  %v4876_v10 = vcombine.low %v113_v61, %v117_v62  ;;  %v129_v14 = vld [vmem:[#allocation5 + $0x110] sm:$0xff] }
  0xd1   :  { %2493 = vmatprep.subr.bf16.mxu0 %v5161_v22  ;;  %2616 = vmatprep.subr.bf16.mxu1 %v5163_v27  ;;  %v463_v22 = vld [vmem:[#allocation5 + $0xb80] sm:$0xff]  ;;  %v468_v27 = vld [vmem:[#allocation5 + $0xba8] sm:$0xff]  ;;  %v133_v16 = vld [vmem:[#allocation5 + $0x130] sm:$0xff] }
  0xd2   :  { %v5227_v63 = vcombine.high %v464_v25, %v468_v27  ;;  %v5224_v37 = vcombine.low %v463_v22, %v467_v23 }
  0xd4   :  { %2494 = vmatpush1.bf16.msra.mxu0 %v5160_v30  ;;  %2617 = vmatpush1.bf16.msra.mxu1 %v5162_v31  ;;  %v5218_v30 = vcombine.low %v456_v17, %v460_v59  ;;  %v5225_v31 = vcombine.high %v463_v22, %v467_v23  ;;  %v130_v17 = vld [vmem:[#allocation5 + $0x118] sm:$0xff]  ;;  %v4884_v59 = vcombine.low %v121_v5, %v125_v6  ;;  %v141_v22 = vld [vmem:[#allocation5 + $0x170] sm:$0xff] }
  0xd5   :  { %2495 = vmatprep.subr.bf16.mxu0 %v5169_v32  ;;  %2618 = vmatprep.subr.bf16.mxu1 %v5171_v36  ;;  %v471_v32 = vld [vmem:[#allocation5 + $0xbc0] sm:$0xff]  ;;  %v476_v36 = vld [vmem:[#allocation5 + $0xbe8] sm:$0xff]  ;;  %v138_v23 = vld [vmem:[#allocation5 + $0x158] sm:$0xff] }
  0xd6   :  { %v5235_v44 = vcombine.high %v472_v34, %v476_v36  ;;  %v5232_v46 = vcombine.low %v471_v32, %v475_v33 }
  0xd8   :  { %2496 = vmatpush1.bf16.msra.mxu0 %v5168_v38  ;;  %2619 = vmatpush1.bf16.msra.mxu1 %v5170_v40  ;;  %v5226_v38 = vcombine.low %v464_v25, %v468_v27  ;;  %v5233_v40 = vcombine.high %v471_v32, %v475_v33  ;;  %v142_v25 = vld [vmem:[#allocation5 + $0x178] sm:$0xff]  ;;  %v149_v32 = vld [vmem:[#allocation5 + $0x1b0] sm:$0xff] }
  0xd9   :  { %2497 = vmatprep.subr.bf16.mxu0 %v5177_v41  ;;  %2620 = vmatprep.subr.bf16.mxu1 %v5179_v45  ;;  %v97_v41 = vld [vmem:[#allocation5 + $0x10] sm:$0xff]  ;;  %v102_v45 = vld [vmem:[#allocation5 + $0x38] sm:$0xff] }
  0xda   :  { %v4863_v52 = vcombine.high %v98_v43, %v102_v45  ;;  %v146_v33 = vld [vmem:[#allocation5 + $0x198] sm:$0xff] }
  0xdc   :  { %2498 = vmatpush1.bf16.msra.mxu0 %v5176_v47  ;;  %2621 = vmatpush1.bf16.msra.mxu1 %v5178_v15  ;;  %v5234_v47 = vcombine.low %v472_v34, %v476_v36  ;;  %v4861_v15 = vcombine.high %v97_v41, %v101_v42  ;;  %v150_v34 = vld [vmem:[#allocation5 + $0x1b8] sm:$0xff]  ;;  %v4902_v36 = vcombine.low %v138_v23, %v142_v25 }
  0xdd   :  { %2499 = vmatprep.subr.bf16.mxu0 %v5185_v49  ;;  %2622 = vmatprep.subr.bf16.mxu1 %v5187_v54  ;;  %v105_v49 = vld [vmem:[#allocation5 + $0x50] sm:$0xff]  ;;  %v110_v54 = vld [vmem:[#allocation5 + $0x78] sm:$0xff] }
  0xde   :  { %v4871_v60 = vcombine.high %v106_v51, %v110_v54  ;;  %v4870_v29 = vcombine.low %v106_v51, %v110_v54  ;;  %v166_v51 = vld [vmem:[#allocation5 + $0x238] sm:$0xff] }
  0xe0   :  { %2500 = vmatpush1.bf16.msra.mxu0 %v5184_v56  ;;  %2623 = vmatpush1.bf16.msra.mxu1 %v5186_v57  ;;  %v4860_v56 = vcombine.low %v97_v41, %v101_v42  ;;  %v4862_v57 = vcombine.low %v98_v43, %v102_v45  ;;  %v157_v41 = vld [vmem:[#allocation5 + $0x1f0] sm:$0xff]  ;;  %v154_v42 = vld [vmem:[#allocation5 + $0x1d8] sm:$0xff]  ;;  %v4910_v45 = vcombine.low %v146_v33, %v150_v34 }
  0xe1   :  { %2501 = vmatprep.subr.bf16.mxu0 %v5193_v58  ;;  %2624 = vmatprep.subr.bf16.mxu1 %v5195_v0  ;;  %v4869_v58 = vcombine.high %v105_v49, %v109_v50  ;;  %v114_v0 = vld [vmem:[#allocation5 + $0x98] sm:$0xff] }
  0xe2   :  { %v158_v43 = vld [vmem:[#allocation5 + $0x1f8] sm:$0xff] }
  0xe3   :  { %v4918_v54 = vcombine.low %v154_v42, %v158_v43 }
  0xe4   :  { %2502 = vmatpush1.bf16.msra.mxu0 %v5192_v2  ;;  %2625 = vmatpush1.bf16.msra.mxu1 %v5194_v3  ;;  %v4868_v2 = vcombine.low %v105_v49, %v109_v50  ;;  %v4877_v3 = vcombine.high %v113_v61, %v117_v62  ;;  %v165_v49 = vld [vmem:[#allocation5 + $0x230] sm:$0xff]  ;;  %v162_v50 = vld [vmem:[#allocation5 + $0x218] sm:$0xff] }
  0xe5   :  { %2503 = vmatprep.subr.bf16.mxu0 %v5201_v4  ;;  %2626 = vmatprep.subr.bf16.mxu1 %v5203_v8  ;;  %v4879_v4 = vcombine.high %v114_v0, %v118_v1  ;;  %v126_v8 = vld [vmem:[#allocation5 + $0xf8] sm:$0xff] }
  0xe6   :  { %v170_v61 = vld [vmem:[#allocation5 + $0x258] sm:$0xff] }
  0xe7   :  { %v174_v62 = vld [vmem:[#allocation5 + $0x278] sm:$0xff] }
  0xe8   :  { %2504 = vmatpush1.bf16.msra.mxu0 %v5200_v11  ;;  %2627 = vmatpush1.bf16.msra.mxu1 %v5202_v12  ;;  %v4878_v11 = vcombine.low %v114_v0, %v118_v1  ;;  %v4885_v12 = vcombine.high %v121_v5, %v125_v6  ;;  %v4926_v1 = vcombine.low %v162_v50, %v166_v51  ;;  %v178_v5 = vld [vmem:[#allocation5 + $0x298] sm:$0xff] }
  0xe9   :  { %2505 = vmatprep.subr.bf16.mxu0 %v5209_v13  ;;  %2628 = vmatprep.subr.bf16.mxu1 %v5211_v18  ;;  %v4887_v13 = vcombine.high %v122_v7, %v126_v8  ;;  %v134_v18 = vld [vmem:[#allocation5 + $0x138] sm:$0xff] }
  0xea   :  { %v4894_v27 = vcombine.low %v130_v17, %v134_v18  ;;  %v182_v6 = vld [vmem:[#allocation5 + $0x2b8] sm:$0xff] }
  0xec   :  { %2506 = vmatpush1.bf16.msra.mxu0 %v5208_v19  ;;  %2629 = vmatpush1.bf16.msra.mxu1 %v5210_v20  ;;  %v4886_v19 = vcombine.low %v122_v7, %v126_v8  ;;  %v4893_v20 = vcombine.high %v129_v14, %v133_v16  ;;  %v4934_v8 = vcombine.low %v170_v61, %v174_v62 }
  0xed   :  { %2507 = vmatprep.subr.bf16.mxu0 %v5217_v21  ;;  %2630 = vmatprep.subr.bf16.mxu1 %v5219_v26  ;;  %v137_v21 = vld [vmem:[#allocation5 + $0x150] sm:$0xff]  ;;  %v4892_v26 = vcombine.low %v129_v14, %v133_v16  ;;  %v186_v14 = vld [vmem:[#allocation5 + $0x2d8] sm:$0xff] }
  0xee   :  { %v190_v16 = vld [vmem:[#allocation5 + $0x2f8] sm:$0xff] }
  0xf0   :  { %2508 = vmatpush1.bf16.msra.mxu0 %v5216_v28  ;;  %2631 = vmatpush1.bf16.msra.mxu1 %v5218_v30  ;;  %v4901_v28 = vcombine.high %v137_v21, %v141_v22  ;;  %v4903_v30 = vcombine.high %v138_v23, %v142_v25  ;;  %v4950_v25 = vcombine.low %v186_v14, %v190_v16 }
  0xf1   :  { %2509 = vmatprep.subr.bf16.mxu0 %v5225_v31  ;;  %2632 = vmatprep.subr.bf16.mxu1 %v5227_v63  ;;  %v145_v31 = vld [vmem:[#allocation5 + $0x190] sm:$0xff]  ;;  %v4900_v63 = vcombine.low %v137_v21, %v141_v22  ;;  %v194_v21 = vld [vmem:[#allocation5 + $0x318] sm:$0xff] }
  0xf2   :  { %v198_v22 = vld [vmem:[#allocation5 + $0x338] sm:$0xff] }
  0xf4   :  { %2510 = vmatpush1.bf16.msra.mxu0 %v5224_v37  ;;  %2633 = vmatpush1.bf16.msra.mxu1 %v5226_v38  ;;  %v4909_v37 = vcombine.high %v145_v31, %v149_v32  ;;  %v4911_v38 = vcombine.high %v146_v33, %v150_v34  ;;  %v4958_v34 = vcombine.low %v194_v21, %v198_v22 }
  0xf5   :  { %2511 = vmatprep.subr.bf16.mxu0 %v5233_v40  ;;  %2634 = vmatprep.subr.bf16.mxu1 %v5235_v44  ;;  %v153_v40 = vld [vmem:[#allocation5 + $0x1d0] sm:$0xff]  ;;  %v4908_v44 = vcombine.low %v145_v31, %v149_v32  ;;  %v202_v31 = vld [vmem:[#allocation5 + $0x358] sm:$0xff] }
  0xf6   :  { %v206_v32 = vld [vmem:[#allocation5 + $0x378] sm:$0xff] }
  0xf8   :  { %2512 = vmatpush1.bf16.msra.mxu0 %v5232_v46  ;;  %2635 = vmatpush1.bf16.msra.mxu1 %v5234_v47  ;;  %v4917_v46 = vcombine.high %v153_v40, %v157_v41  ;;  %v4919_v47 = vcombine.high %v154_v42, %v158_v43  ;;  %v4966_v43 = vcombine.low %v202_v31, %v206_v32 }
  0xf9   :  { %2645 = vmatprep.subr.bf16.mxu0 %v4861_v15  ;;  %2768 = vmatprep.subr.bf16.mxu1 %v4863_v52  ;;  %v161_v15 = vld [vmem:[#allocation5 + $0x210] sm:$0xff]  ;;  %v4916_v52 = vcombine.low %v153_v40, %v157_v41  ;;  %v210_v40 = vld [vmem:[#allocation5 + $0x398] sm:$0xff] }
  0xfa   :  { %v4924_v0 = vcombine.low %v161_v15, %v165_v49  ;;  %v214_v41 = vld [vmem:[#allocation5 + $0x3b8] sm:$0xff] }
  0xfb   :  { %2514 = vmatmul.mubr.bf16.vlgmr.msra.gmra.mrb[0].mxu0 %v6156_v55  ;;  %2637 = vmatmul.mubr.bf16.vlgmr.msra.gmra.mrb[0].mxu1 %v6156_v55 }
  0xfc   :  { %2646 = vmatpush1.bf16.msra.mxu0 %v4860_v56  ;;  %2769 = vmatpush1.bf16.msra.mxu1 %v4862_v57  ;;  %v4925_v56 = vcombine.high %v161_v15, %v165_v49  ;;  %v4927_v57 = vcombine.high %v162_v50, %v166_v51  ;;  %v218_v15 = vld [vmem:[#allocation5 + $0x3d8] sm:$0xff]  ;;  %v4974_v51 = vcombine.low %v210_v40, %v214_v41 }
  0xfd   :  { %2647 = vmatprep.subr.bf16.mxu0 %v4869_v58  ;;  %2770 = vmatprep.subr.bf16.mxu1 %v4871_v60  ;;  %v169_v58 = vld [vmem:[#allocation5 + $0x250] sm:$0xff]  ;;  %v222_v49 = vld [vmem:[#allocation5 + $0x3f8] sm:$0xff] }
  0xfe   :  { %2677 = vmatprep.mubr.bf16.mxu0 %v6119_v9  ;;  %2800 = vmatprep.mubr.bf16.mxu1 %v6119_v9  ;;  %v4895_v9 = vcombine.high %v130_v17, %v134_v18  ;;  %v173_v60 = vld [vmem:[#allocation5 + $0x270] sm:$0xff]  ;;  %v4942_v18 = vcombine.low %v178_v5, %v182_v6 }
  0xff   :  { %v4932_v7 = vcombine.low %v169_v58, %v173_v60 }
 0x100   :  { %2648 = vmatpush1.bf16.msra.mxu0 %v4868_v2  ;;  %2771 = vmatpush1.bf16.msra.mxu1 %v4870_v29  ;;  %v4933_v2 = vcombine.high %v169_v58, %v173_v60  ;;  %v4935_v29 = vcombine.high %v170_v61, %v174_v62  ;;  %v226_v58 = vld [vmem:[#allocation5 + $0x418] sm:$0xff]  ;;  %v4982_v62 = vcombine.low %v218_v15, %v222_v49 }
 0x101   :  { %2649 = vmatprep.subr.bf16.mxu0 %v4877_v3  ;;  %2772 = vmatprep.subr.bf16.mxu1 %v4879_v4  ;;  %v177_v3 = vld [vmem:[#allocation5 + $0x290] sm:$0xff]  ;;  %v230_v60 = vld [vmem:[#allocation5 + $0x438] sm:$0xff] }
 0x102   :  { %v181_v4 = vld [vmem:[#allocation5 + $0x2b0] sm:$0xff] }
 0x103   :  { %v4940_v17 = vcombine.low %v177_v3, %v181_v4 }
 0x104   :  { %2650 = vmatpush1.bf16.msra.mxu0 %v4876_v10  ;;  %2773 = vmatpush1.bf16.msra.mxu1 %v4878_v11  ;;  %v4941_v10 = vcombine.high %v177_v3, %v181_v4  ;;  %v4943_v11 = vcombine.high %v178_v5, %v182_v6  ;;  %v234_v3 = vld [vmem:[#allocation5 + $0x458] sm:$0xff]  ;;  %v4990_v6 = vcombine.low %v226_v58, %v230_v60 }
 0x105   :  { %2651 = vmatprep.subr.bf16.mxu0 %v4885_v12  ;;  %2774 = vmatprep.subr.bf16.mxu1 %v4887_v13  ;;  %v185_v12 = vld [vmem:[#allocation5 + $0x2d0] sm:$0xff]  ;;  %v238_v4 = vld [vmem:[#allocation5 + $0x478] sm:$0xff] }
 0x106   :  { %v189_v13 = vld [vmem:[#allocation5 + $0x2f0] sm:$0xff] }
 0x107   :  { %v4948_v23 = vcombine.low %v185_v12, %v189_v13 }
 0x108   :  { %2652 = vmatpush1.bf16.msra.mxu0 %v4884_v59  ;;  %2775 = vmatpush1.bf16.msra.mxu1 %v4886_v19  ;;  %v4949_v59 = vcombine.high %v185_v12, %v189_v13  ;;  %v4951_v19 = vcombine.high %v186_v14, %v190_v16  ;;  %v242_v12 = vld [vmem:[#allocation5 + $0x498] sm:$0xff]  ;;  %v4998_v16 = vcombine.low %v234_v3, %v238_v4 }
 0x109   :  { %2653 = vmatprep.subr.bf16.mxu0 %v4893_v20  ;;  %2776 = vmatprep.subr.bf16.mxu1 %v4895_v9  ;;  %v193_v20 = vld [vmem:[#allocation5 + $0x310] sm:$0xff]  ;;  %v246_v13 = vld [vmem:[#allocation5 + $0x4b8] sm:$0xff] }
 0x10a   :  { %v197_v9 = vld [vmem:[#allocation5 + $0x330] sm:$0xff] }
 0x10b   :  { %v4956_v33 = vcombine.low %v193_v20, %v197_v9 }
 0x10c   :  { %2654 = vmatpush1.bf16.msra.mxu0 %v4892_v26  ;;  %2777 = vmatpush1.bf16.msra.mxu1 %v4894_v27  ;;  %v4957_v26 = vcombine.high %v193_v20, %v197_v9  ;;  %v4959_v27 = vcombine.high %v194_v21, %v198_v22  ;;  %v250_v20 = vld [vmem:[#allocation5 + $0x4d8] sm:$0xff] }
 0x10d   :  { %2655 = vmatprep.subr.bf16.mxu0 %v4901_v28  ;;  %2778 = vmatprep.subr.bf16.mxu1 %v4903_v30  ;;  %v201_v28 = vld [vmem:[#allocation5 + $0x350] sm:$0xff]  ;;  %v254_v9 = vld [vmem:[#allocation5 + $0x4f8] sm:$0xff] }
 0x10e   :  { %v205_v30 = vld [vmem:[#allocation5 + $0x370] sm:$0xff] }
 0x10f   :  { %v4964_v42 = vcombine.low %v201_v28, %v205_v30 }
 0x110   :  { %2656 = vmatpush1.bf16.msra.mxu0 %v4900_v63  ;;  %2779 = vmatpush1.bf16.msra.mxu1 %v4902_v36  ;;  %v4965_v63 = vcombine.high %v201_v28, %v205_v30  ;;  %v4967_v36 = vcombine.high %v202_v31, %v206_v32  ;;  %v262_v28 = vld [vmem:[#allocation5 + $0x538] sm:$0xff]  ;;  %v5014_v31 = vcombine.low %v250_v20, %v254_v9 }
 0x111   :  { %2657 = vmatprep.subr.bf16.mxu0 %v4909_v37  ;;  %2780 = vmatprep.subr.bf16.mxu1 %v4911_v38  ;;  %v209_v37 = vld [vmem:[#allocation5 + $0x390] sm:$0xff] }
 0x112   :  { %v213_v38 = vld [vmem:[#allocation5 + $0x3b0] sm:$0xff] }
 0x113   :  { %v4972_v50 = vcombine.low %v209_v37, %v213_v38 }
 0x114   :  { %2658 = vmatpush1.bf16.msra.mxu0 %v4908_v44  ;;  %2781 = vmatpush1.bf16.msra.mxu1 %v4910_v45  ;;  %v4973_v44 = vcombine.high %v209_v37, %v213_v38  ;;  %v4975_v45 = vcombine.high %v210_v40, %v214_v41 }
 0x115   :  { %2659 = vmatprep.subr.bf16.mxu0 %v4917_v46  ;;  %2782 = vmatprep.subr.bf16.mxu1 %v4919_v47  ;;  %v217_v46 = vld [vmem:[#allocation5 + $0x3d0] sm:$0xff] }
 0x116   :  { %v221_v47 = vld [vmem:[#allocation5 + $0x3f0] sm:$0xff] }
 0x117   :  { %v4980_v61 = vcombine.low %v217_v46, %v221_v47 }
 0x118   :  { %2660 = vmatpush1.bf16.msra.mxu0 %v4916_v52  ;;  %2783 = vmatpush1.bf16.msra.mxu1 %v4918_v54  ;;  %v4981_v52 = vcombine.high %v217_v46, %v221_v47  ;;  %v4983_v54 = vcombine.high %v218_v15, %v222_v49 }
 0x119   :  { %2661 = vmatprep.subr.bf16.mxu0 %v4925_v56  ;;  %2784 = vmatprep.subr.bf16.mxu1 %v4927_v57  ;;  %v225_v56 = vld [vmem:[#allocation5 + $0x410] sm:$0xff] }
 0x11a   :  { %v229_v57 = vld [vmem:[#allocation5 + $0x430] sm:$0xff] }
 0x11b   :  { %v4988_v5 = vcombine.low %v225_v56, %v229_v57 }
 0x11c   :  { %2662 = vmatpush1.bf16.msra.mxu0 %v4924_v0  ;;  %2785 = vmatpush1.bf16.msra.mxu1 %v4926_v1  ;;  %v4989_v0 = vcombine.high %v225_v56, %v229_v57  ;;  %v4991_v1 = vcombine.high %v226_v58, %v230_v60 }
 0x11d   :  { %2663 = vmatprep.subr.bf16.mxu0 %v4933_v2  ;;  %2786 = vmatprep.subr.bf16.mxu1 %v4935_v29  ;;  %v233_v2 = vld [vmem:[#allocation5 + $0x450] sm:$0xff] }
 0x11e   :  { %v237_v29 = vld [vmem:[#allocation5 + $0x470] sm:$0xff] }
 0x11f   :  { %v4996_v14 = vcombine.low %v233_v2, %v237_v29 }
 0x120   :  { %2664 = vmatpush1.bf16.msra.mxu0 %v4932_v7  ;;  %2787 = vmatpush1.bf16.msra.mxu1 %v4934_v8  ;;  %v4997_v7 = vcombine.high %v233_v2, %v237_v29  ;;  %v4999_v8 = vcombine.high %v234_v3, %v238_v4 }
 0x121   :  { %2665 = vmatprep.subr.bf16.mxu0 %v4941_v10  ;;  %2788 = vmatprep.subr.bf16.mxu1 %v4943_v11  ;;  %v241_v10 = vld [vmem:[#allocation5 + $0x490] sm:$0xff] }
 0x122   :  { %v245_v11 = vld [vmem:[#allocation5 + $0x4b0] sm:$0xff] }
 0x123   :  { %v5004_v21 = vcombine.low %v241_v10, %v245_v11 }
 0x124   :  { %2666 = vmatpush1.bf16.msra.mxu0 %v4940_v17  ;;  %2789 = vmatpush1.bf16.msra.mxu1 %v4942_v18  ;;  %v5005_v17 = vcombine.high %v241_v10, %v245_v11  ;;  %v5007_v18 = vcombine.high %v242_v12, %v246_v13 }
 0x125   :  { %2667 = vmatprep.subr.bf16.mxu0 %v4949_v59  ;;  %2790 = vmatprep.subr.bf16.mxu1 %v4951_v19  ;;  %v249_v59 = vld [vmem:[#allocation5 + $0x4d0] sm:$0xff] }
 0x126   :  { %v253_v19 = vld [vmem:[#allocation5 + $0x4f0] sm:$0xff] }
 0x127   :  { %v5013_v22 = vcombine.high %v249_v59, %v253_v19  ;;  %v5012_v30 = vcombine.low %v249_v59, %v253_v19 }
 0x128   :  { %2668 = vmatpush1.bf16.msra.mxu0 %v4948_v23  ;;  %2791 = vmatpush1.bf16.msra.mxu1 %v4950_v25  ;;  %v5015_v23 = vcombine.high %v250_v20, %v254_v9  ;;  %v257_v25 = vld [vmem:[#allocation5 + $0x510] sm:$0xff] }
 0x129   :  { %2669 = vmatprep.subr.bf16.mxu0 %v4957_v26  ;;  %2792 = vmatprep.subr.bf16.mxu1 %v4959_v27  ;;  %v261_v26 = vld [vmem:[#allocation5 + $0x530] sm:$0xff]  ;;  %v258_v27 = vld [vmem:[#allocation5 + $0x518] sm:$0xff] }
 0x12a   :  { %v5021_v32 = vcombine.high %v257_v25, %v261_v26  ;;  %v5020_v37 = vcombine.low %v257_v25, %v261_v26  ;;  %v5022_v38 = vcombine.low %v258_v27, %v262_v28 }
 0x12c   :  { %2670 = vmatpush1.bf16.msra.mxu0 %v4956_v33  ;;  %2793 = vmatpush1.bf16.msra.mxu1 %v4958_v34  ;;  %v265_v33 = vld [vmem:[#allocation5 + $0x550] sm:$0xff] }
 0x12d   :  { %2671 = vmatprep.subr.bf16.mxu0 %v4965_v63  ;;  %2794 = vmatprep.subr.bf16.mxu1 %v4967_v36  ;;  %v269_v34 = vld [vmem:[#allocation5 + $0x570] sm:$0xff]  ;;  %v266_v63 = vld [vmem:[#allocation5 + $0x558] sm:$0xff] }
 0x12e   :  { %v270_v36 = vld [vmem:[#allocation5 + $0x578] sm:$0xff]  ;;  %v5029_v40 = vcombine.high %v265_v33, %v269_v34  ;;  %v5028_v46 = vcombine.low %v265_v33, %v269_v34 }
 0x12f   :  { %v5031_v41 = vcombine.high %v266_v63, %v270_v36  ;;  %v5030_v47 = vcombine.low %v266_v63, %v270_v36 }
 0x130   :  { %2672 = vmatpush1.bf16.msra.mxu0 %v4964_v42  ;;  %2795 = vmatpush1.bf16.msra.mxu1 %v4966_v43  ;;  %v273_v42 = vld [vmem:[#allocation5 + $0x590] sm:$0xff] }
 0x131   :  { %2673 = vmatprep.subr.bf16.mxu0 %v4973_v44  ;;  %2796 = vmatprep.subr.bf16.mxu1 %v4975_v45  ;;  %v277_v43 = vld [vmem:[#allocation5 + $0x5b0] sm:$0xff]  ;;  %v274_v44 = vld [vmem:[#allocation5 + $0x598] sm:$0xff] }
 0x132   :  { %v278_v45 = vld [vmem:[#allocation5 + $0x5b8] sm:$0xff]  ;;  %v5037_v15 = vcombine.high %v273_v42, %v277_v43  ;;  %v5036_v56 = vcombine.low %v273_v42, %v277_v43 }
 0x133   :  { %v5039_v49 = vcombine.high %v274_v44, %v278_v45  ;;  %v5038_v57 = vcombine.low %v274_v44, %v278_v45 }
 0x134   :  { %2674 = vmatpush1.bf16.msra.mxu0 %v4972_v50  ;;  %2797 = vmatpush1.bf16.msra.mxu1 %v4974_v51  ;;  %v281_v50 = vld [vmem:[#allocation5 + $0x5d0] sm:$0xff] }
 0x135   :  { %2675 = vmatprep.subr.bf16.mxu0 %v4981_v52  ;;  %2798 = vmatprep.subr.bf16.mxu1 %v4983_v54  ;;  %v285_v51 = vld [vmem:[#allocation5 + $0x5f0] sm:$0xff]  ;;  %v282_v52 = vld [vmem:[#allocation5 + $0x5d8] sm:$0xff] }
 0x136   :  { %v286_v54 = vld [vmem:[#allocation5 + $0x5f8] sm:$0xff]  ;;  %v5045_v58 = vcombine.high %v281_v50, %v285_v51  ;;  %v5044_v2 = vcombine.low %v281_v50, %v285_v51 }
 0x137   :  { %v5047_v60 = vcombine.high %v282_v52, %v286_v54  ;;  %v5046_v29 = vcombine.low %v282_v52, %v286_v54 }
 0x138   :  { %2676 = vmatpush1.bf16.msra.mxu0 %v4980_v61  ;;  %2799 = vmatpush1.bf16.msra.mxu1 %v4982_v62  ;;  %v289_v61 = vld [vmem:[#allocation5 + $0x610] sm:$0xff] }
 0x139   :  { %2686 = vmatprep.subr.bf16.mxu0 %v4989_v0  ;;  %2809 = vmatprep.subr.bf16.mxu1 %v4991_v1  ;;  %v293_v62 = vld [vmem:[#allocation5 + $0x630] sm:$0xff]  ;;  %v290_v0 = vld [vmem:[#allocation5 + $0x618] sm:$0xff] }
 0x13a   :  { %v294_v1 = vld [vmem:[#allocation5 + $0x638] sm:$0xff]  ;;  %v5053_v3 = vcombine.high %v289_v61, %v293_v62  ;;  %v5052_v10 = vcombine.low %v289_v61, %v293_v62 }
 0x13b   :  { %2678 = vmatmul.mubr.bf16.vlgmr.msra.gmra.mrb[4].mxu0 %v6132_v24  ;;  %2801 = vmatmul.mubr.bf16.vlgmr.msra.gmra.mrb[4].mxu1 %v6132_v24  ;;  %v5006_v24 = vcombine.low %v242_v12, %v246_v13  ;;  %v5055_v4 = vcombine.high %v290_v0, %v294_v1  ;;  %v5054_v11 = vcombine.low %v290_v0, %v294_v1 }
 0x13c   :  { %2687 = vmatpush1.bf16.msra.mxu0 %v4988_v5  ;;  %2810 = vmatpush1.bf16.msra.mxu1 %v4990_v6  ;;  %v297_v5 = vld [vmem:[#allocation5 + $0x650] sm:$0xff] }
 0x13d   :  { %2688 = vmatprep.subr.bf16.mxu0 %v4997_v7  ;;  %2811 = vmatprep.subr.bf16.mxu1 %v4999_v8  ;;  %v301_v6 = vld [vmem:[#allocation5 + $0x670] sm:$0xff]  ;;  %v298_v7 = vld [vmem:[#allocation5 + $0x658] sm:$0xff] }
 0x13e   :  { %2718 = vmatprep.mubr.bf16.mxu0 %v6134_v35  ;;  %2841 = vmatprep.mubr.bf16.mxu1 %v6134_v35  ;;  %v5023_v35 = vcombine.high %v258_v27, %v262_v28  ;;  %v302_v8 = vld [vmem:[#allocation5 + $0x678] sm:$0xff]  ;;  %v5061_v12 = vcombine.high %v297_v5, %v301_v6  ;;  %v5060_v59 = vcombine.low %v297_v5, %v301_v6 }
 0x13f   :  { %v5063_v13 = vcombine.high %v298_v7, %v302_v8  ;;  %v5062_v19 = vcombine.low %v298_v7, %v302_v8 }
 0x140   :  { %2689 = vmatpush1.bf16.msra.mxu0 %v4996_v14  ;;  %2812 = vmatpush1.bf16.msra.mxu1 %v4998_v16  ;;  %v305_v14 = vld [vmem:[#allocation5 + $0x690] sm:$0xff] }
 0x141   :  { %2690 = vmatprep.subr.bf16.mxu0 %v5005_v17  ;;  %2813 = vmatprep.subr.bf16.mxu1 %v5007_v18  ;;  %v309_v16 = vld [vmem:[#allocation5 + $0x6b0] sm:$0xff]  ;;  %v306_v17 = vld [vmem:[#allocation5 + $0x698] sm:$0xff] }
 0x142   :  { %v310_v18 = vld [vmem:[#allocation5 + $0x6b8] sm:$0xff]  ;;  %v5069_v20 = vcombine.high %v305_v14, %v309_v16  ;;  %v5068_v25 = vcombine.low %v305_v14, %v309_v16 }
 0x143   :  { %v5071_v9 = vcombine.high %v306_v17, %v310_v18  ;;  %v5070_v26 = vcombine.low %v306_v17, %v310_v18 }
 0x144   :  { %2691 = vmatpush1.bf16.msra.mxu0 %v5004_v21  ;;  %2814 = vmatpush1.bf16.msra.mxu1 %v5006_v24  ;;  %v313_v21 = vld [vmem:[#allocation5 + $0x6d0] sm:$0xff] }
 0x145   :  { %2692 = vmatprep.subr.bf16.mxu0 %v5013_v22  ;;  %2815 = vmatprep.subr.bf16.mxu1 %v5015_v23  ;;  %v317_v24 = vld [vmem:[#allocation5 + $0x6f0] sm:$0xff]  ;;  %v314_v22 = vld [vmem:[#allocation5 + $0x6d8] sm:$0xff] }
 0x146   :  { %v318_v23 = vld [vmem:[#allocation5 + $0x6f8] sm:$0xff]  ;;  %v5077_v27 = vcombine.high %v313_v21, %v317_v24  ;;  %v5076_v33 = vcombine.low %v313_v21, %v317_v24 }
 0x147   :  { %v5079_v28 = vcombine.high %v314_v22, %v318_v23  ;;  %v5078_v34 = vcombine.low %v314_v22, %v318_v23 }
 0x148   :  { %2693 = vmatpush1.bf16.msra.mxu0 %v5012_v30  ;;  %2816 = vmatpush1.bf16.msra.mxu1 %v5014_v31  ;;  %v321_v30 = vld [vmem:[#allocation5 + $0x710] sm:$0xff] }
 0x149   :  { %2694 = vmatprep.subr.bf16.mxu0 %v5021_v32  ;;  %2817 = vmatprep.subr.bf16.mxu1 %v5023_v35  ;;  %v325_v31 = vld [vmem:[#allocation5 + $0x730] sm:$0xff]  ;;  %v322_v32 = vld [vmem:[#allocation5 + $0x718] sm:$0xff] }
 0x14a   :  { %v326_v35 = vld [vmem:[#allocation5 + $0x738] sm:$0xff]  ;;  %v5085_v63 = vcombine.high %v321_v30, %v325_v31  ;;  %v5084_v42 = vcombine.low %v321_v30, %v325_v31 }
 0x14b   :  { %v5087_v36 = vcombine.high %v322_v32, %v326_v35  ;;  %v5086_v43 = vcombine.low %v322_v32, %v326_v35  ;;  %v385_v35 = vld [vmem:[#allocation5 + $0x910] sm:$0xff] }
 0x14c   :  { %2695 = vmatpush1.bf16.msra.mxu0 %v5020_v37  ;;  %2818 = vmatpush1.bf16.msra.mxu1 %v5022_v38  ;;  %v329_v37 = vld [vmem:[#allocation5 + $0x750] sm:$0xff] }
 0x14d   :  { %2696 = vmatprep.subr.bf16.mxu0 %v5029_v40  ;;  %2819 = vmatprep.subr.bf16.mxu1 %v5031_v41  ;;  %v333_v38 = vld [vmem:[#allocation5 + $0x770] sm:$0xff]  ;;  %v330_v40 = vld [vmem:[#allocation5 + $0x758] sm:$0xff] }
 0x14e   :  { %v334_v41 = vld [vmem:[#allocation5 + $0x778] sm:$0xff]  ;;  %v5093_v44 = vcombine.high %v329_v37, %v333_v38  ;;  %v5092_v50 = vcombine.low %v329_v37, %v333_v38 }
 0x14f   :  { %v5095_v45 = vcombine.high %v330_v40, %v334_v41  ;;  %v5094_v51 = vcombine.low %v330_v40, %v334_v41  ;;  %v393_v40 = vld [vmem:[#allocation5 + $0x950] sm:$0xff] }
 0x150   :  { %2697 = vmatpush1.bf16.msra.mxu0 %v5028_v46  ;;  %2820 = vmatpush1.bf16.msra.mxu1 %v5030_v47  ;;  %v337_v46 = vld [vmem:[#allocation5 + $0x790] sm:$0xff] }
 0x151   :  { %2698 = vmatprep.subr.bf16.mxu0 %v5037_v15  ;;  %2821 = vmatprep.subr.bf16.mxu1 %v5039_v49  ;;  %v341_v47 = vld [vmem:[#allocation5 + $0x7b0] sm:$0xff]  ;;  %v338_v15 = vld [vmem:[#allocation5 + $0x798] sm:$0xff] }
 0x152   :  { %v342_v49 = vld [vmem:[#allocation5 + $0x7b8] sm:$0xff]  ;;  %v5101_v52 = vcombine.high %v337_v46, %v341_v47  ;;  %v5100_v61 = vcombine.low %v337_v46, %v341_v47  ;;  %v397_v41 = vld [vmem:[#allocation5 + $0x970] sm:$0xff] }
 0x153   :  { %v5103_v54 = vcombine.high %v338_v15, %v342_v49  ;;  %v5102_v62 = vcombine.low %v338_v15, %v342_v49  ;;  %v5157_v46 = vcombine.high %v393_v40, %v397_v41  ;;  %v401_v15 = vld [vmem:[#allocation5 + $0x990] sm:$0xff] }
 0x154   :  { %2699 = vmatpush1.bf16.msra.mxu0 %v5036_v56  ;;  %2822 = vmatpush1.bf16.msra.mxu1 %v5038_v57  ;;  %v345_v56 = vld [vmem:[#allocation5 + $0x7d0] sm:$0xff] }
 0x155   :  { %2700 = vmatprep.subr.bf16.mxu0 %v5045_v58  ;;  %2823 = vmatprep.subr.bf16.mxu1 %v5047_v60  ;;  %v349_v57 = vld [vmem:[#allocation5 + $0x7f0] sm:$0xff]  ;;  %v346_v58 = vld [vmem:[#allocation5 + $0x7d8] sm:$0xff] }
 0x156   :  { %v350_v60 = vld [vmem:[#allocation5 + $0x7f8] sm:$0xff]  ;;  %v5109_v0 = vcombine.high %v345_v56, %v349_v57  ;;  %v5108_v5 = vcombine.low %v345_v56, %v349_v57  ;;  %v405_v49 = vld [vmem:[#allocation5 + $0x9b0] sm:$0xff] }
 0x157   :  { %v5111_v1 = vcombine.high %v346_v58, %v350_v60  ;;  %v5110_v6 = vcombine.low %v346_v58, %v350_v60  ;;  %v5165_v56 = vcombine.high %v401_v15, %v405_v49  ;;  %v409_v58 = vld [vmem:[#allocation5 + $0x9d0] sm:$0xff] }
 0x158   :  { %2701 = vmatpush1.bf16.msra.mxu0 %v5044_v2  ;;  %2824 = vmatpush1.bf16.msra.mxu1 %v5046_v29  ;;  %v353_v2 = vld [vmem:[#allocation5 + $0x810] sm:$0xff] }
 0x159   :  { %2702 = vmatprep.subr.bf16.mxu0 %v5053_v3  ;;  %2825 = vmatprep.subr.bf16.mxu1 %v5055_v4  ;;  %v357_v29 = vld [vmem:[#allocation5 + $0x830] sm:$0xff]  ;;  %v354_v3 = vld [vmem:[#allocation5 + $0x818] sm:$0xff] }
 0x15a   :  { %v358_v4 = vld [vmem:[#allocation5 + $0x838] sm:$0xff]  ;;  %v5117_v7 = vcombine.high %v353_v2, %v357_v29  ;;  %v5116_v14 = vcombine.low %v353_v2, %v357_v29  ;;  %v413_v60 = vld [vmem:[#allocation5 + $0x9f0] sm:$0xff] }
 0x15b   :  { %v5119_v8 = vcombine.high %v354_v3, %v358_v4  ;;  %v5118_v16 = vcombine.low %v354_v3, %v358_v4  ;;  %v5173_v2 = vcombine.high %v409_v58, %v413_v60  ;;  %v417_v3 = vld [vmem:[#allocation5 + $0xa10] sm:$0xff] }
 0x15c   :  { %2703 = vmatpush1.bf16.msra.mxu0 %v5052_v10  ;;  %2826 = vmatpush1.bf16.msra.mxu1 %v5054_v11  ;;  %v361_v10 = vld [vmem:[#allocation5 + $0x850] sm:$0xff] }
 0x15d   :  { %2704 = vmatprep.subr.bf16.mxu0 %v5061_v12  ;;  %2827 = vmatprep.subr.bf16.mxu1 %v5063_v13  ;;  %v365_v11 = vld [vmem:[#allocation5 + $0x870] sm:$0xff]  ;;  %v362_v12 = vld [vmem:[#allocation5 + $0x858] sm:$0xff] }
 0x15e   :  { %v366_v13 = vld [vmem:[#allocation5 + $0x878] sm:$0xff]  ;;  %v5125_v17 = vcombine.high %v361_v10, %v365_v11  ;;  %v5124_v21 = vcombine.low %v361_v10, %v365_v11  ;;  %v421_v4 = vld [vmem:[#allocation5 + $0xa30] sm:$0xff] }
 0x15f   :  { %v5127_v18 = vcombine.high %v362_v12, %v366_v13  ;;  %v5126_v24 = vcombine.low %v362_v12, %v366_v13  ;;  %v5181_v10 = vcombine.high %v417_v3, %v421_v4  ;;  %v425_v12 = vld [vmem:[#allocation5 + $0xa50] sm:$0xff] }
 0x160   :  { %2705 = vmatpush1.bf16.msra.mxu0 %v5060_v59  ;;  %2828 = vmatpush1.bf16.msra.mxu1 %v5062_v19  ;;  %v369_v59 = vld [vmem:[#allocation5 + $0x890] sm:$0xff] }
 0x161   :  { %2706 = vmatprep.subr.bf16.mxu0 %v5069_v20  ;;  %2829 = vmatprep.subr.bf16.mxu1 %v5071_v9  ;;  %v373_v19 = vld [vmem:[#allocation5 + $0x8b0] sm:$0xff]  ;;  %v370_v20 = vld [vmem:[#allocation5 + $0x898] sm:$0xff] }
 0x162   :  { %v374_v9 = vld [vmem:[#allocation5 + $0x8b8] sm:$0xff]  ;;  %v5133_v22 = vcombine.high %v369_v59, %v373_v19  ;;  %v5132_v30 = vcombine.low %v369_v59, %v373_v19  ;;  %v429_v13 = vld [vmem:[#allocation5 + $0xa70] sm:$0xff] }
 0x163   :  { %v5135_v23 = vcombine.high %v370_v20, %v374_v9  ;;  %v5189_v59 = vcombine.high %v425_v12, %v429_v13 }
 0x164   :  { %2707 = vmatpush1.bf16.msra.mxu0 %v5068_v25  ;;  %2830 = vmatpush1.bf16.msra.mxu1 %v5070_v26  ;;  %v377_v25 = vld [vmem:[#allocation5 + $0x8d0] sm:$0xff] }
 0x165   :  { %2708 = vmatprep.subr.bf16.mxu0 %v5077_v27  ;;  %2831 = vmatprep.subr.bf16.mxu1 %v5079_v28  ;;  %v381_v26 = vld [vmem:[#allocation5 + $0x8f0] sm:$0xff]  ;;  %v378_v27 = vld [vmem:[#allocation5 + $0x8d8] sm:$0xff] }
 0x166   :  { %v382_v28 = vld [vmem:[#allocation5 + $0x8f8] sm:$0xff]  ;;  %v5141_v31 = vcombine.high %v377_v25, %v381_v26 }
 0x167   :  { %v5143_v32 = vcombine.high %v378_v27, %v382_v28  ;;  %v5142_v37 = vcombine.low %v378_v27, %v382_v28  ;;  %v441_v27 = vld [vmem:[#allocation5 + $0xad0] sm:$0xff] }
 0x168   :  { %2709 = vmatpush1.bf16.msra.mxu0 %v5076_v33  ;;  %2832 = vmatpush1.bf16.msra.mxu1 %v5078_v34  ;;  %v389_v33 = vld [vmem:[#allocation5 + $0x930] sm:$0xff]  ;;  %v386_v34 = vld [vmem:[#allocation5 + $0x918] sm:$0xff] }
 0x169   :  { %2710 = vmatprep.subr.bf16.mxu0 %v5085_v63  ;;  %2833 = vmatprep.subr.bf16.mxu1 %v5087_v36  ;;  %v390_v63 = vld [vmem:[#allocation5 + $0x938] sm:$0xff]  ;;  %v5140_v36 = vcombine.low %v377_v25, %v381_v26  ;;  %v5149_v38 = vcombine.high %v385_v35, %v389_v33  ;;  %v445_v28 = vld [vmem:[#allocation5 + $0xaf0] sm:$0xff] }
 0x16c   :  { %2711 = vmatpush1.bf16.msra.mxu0 %v5084_v42  ;;  %2834 = vmatpush1.bf16.msra.mxu1 %v5086_v43  ;;  %v394_v42 = vld [vmem:[#allocation5 + $0x958] sm:$0xff] }
 0x16d   :  { %2712 = vmatprep.subr.bf16.mxu0 %v5093_v44  ;;  %2835 = vmatprep.subr.bf16.mxu1 %v5095_v45  ;;  %v398_v43 = vld [vmem:[#allocation5 + $0x978] sm:$0xff]  ;;  %v5148_v44 = vcombine.low %v385_v35, %v389_v33  ;;  %v5150_v45 = vcombine.low %v386_v34, %v390_v63  ;;  %v5205_v35 = vcombine.high %v441_v27, %v445_v28 }
 0x16e   :  { %v5159_v47 = vcombine.high %v394_v42, %v398_v43 }
 0x170   :  { %2713 = vmatpush1.bf16.msra.mxu0 %v5092_v50  ;;  %2836 = vmatpush1.bf16.msra.mxu1 %v5094_v51  ;;  %v402_v50 = vld [vmem:[#allocation5 + $0x998] sm:$0xff] }
 0x171   :  { %2714 = vmatprep.subr.bf16.mxu0 %v5101_v52  ;;  %2837 = vmatprep.subr.bf16.mxu1 %v5103_v54  ;;  %v406_v51 = vld [vmem:[#allocation5 + $0x9b8] sm:$0xff]  ;;  %v5156_v52 = vcombine.low %v393_v40, %v397_v41  ;;  %v5158_v54 = vcombine.low %v394_v42, %v398_v43  ;;  %v457_v42 = vld [vmem:[#allocation5 + $0xb50] sm:$0xff] }
 0x172   :  { %v5167_v57 = vcombine.high %v402_v50, %v406_v51  ;;  %v461_v43 = vld [vmem:[#allocation5 + $0xb70] sm:$0xff] }
 0x174   :  { %2715 = vmatpush1.bf16.msra.mxu0 %v5100_v61  ;;  %2838 = vmatpush1.bf16.msra.mxu1 %v5102_v62  ;;  %v410_v61 = vld [vmem:[#allocation5 + $0x9d8] sm:$0xff] }
 0x175   :  { %2716 = vmatprep.subr.bf16.mxu0 %v5109_v0  ;;  %2839 = vmatprep.subr.bf16.mxu1 %v5111_v1  ;;  %v414_v62 = vld [vmem:[#allocation5 + $0x9f8] sm:$0xff]  ;;  %v5164_v0 = vcombine.low %v401_v15, %v405_v49  ;;  %v5166_v1 = vcombine.low %v402_v50, %v406_v51  ;;  %v5221_v15 = vcombine.high %v457_v42, %v461_v43  ;;  %v465_v50 = vld [vmem:[#allocation5 + $0xb90] sm:$0xff] }
 0x176   :  { %v5175_v29 = vcombine.high %v410_v61, %v414_v62  ;;  %v469_v51 = vld [vmem:[#allocation5 + $0xbb0] sm:$0xff] }
 0x178   :  { %2717 = vmatpush1.bf16.msra.mxu0 %v5108_v5  ;;  %2840 = vmatpush1.bf16.msra.mxu1 %v5110_v6  ;;  %v418_v5 = vld [vmem:[#allocation5 + $0xa18] sm:$0xff] }
 0x179   :  { %2727 = vmatprep.subr.bf16.mxu0 %v5117_v7  ;;  %2850 = vmatprep.subr.bf16.mxu1 %v5119_v8  ;;  %v422_v6 = vld [vmem:[#allocation5 + $0xa38] sm:$0xff]  ;;  %v5172_v7 = vcombine.low %v409_v58, %v413_v60  ;;  %v5174_v8 = vcombine.low %v410_v61, %v414_v62  ;;  %v5229_v58 = vcombine.high %v465_v50, %v469_v51  ;;  %v473_v61 = vld [vmem:[#allocation5 + $0xbd0] sm:$0xff] }
 0x17a   :  { %v5183_v11 = vcombine.high %v418_v5, %v422_v6  ;;  %v477_v62 = vld [vmem:[#allocation5 + $0xbf0] sm:$0xff] }
 0x17b   :  { %2719 = vmatmul.mubr.bf16.vlgmr.msra.gmra.mrb[4].mxu0 %v6146_v39  ;;  %2842 = vmatmul.mubr.bf16.vlgmr.msra.gmra.mrb[4].mxu1 %v6146_v39  ;;  %v5134_v39 = vcombine.low %v370_v20, %v374_v9  ;;  %v433_v20 = vld [vmem:[#allocation5 + $0xa90] sm:$0xff] }
 0x17c   :  { %2728 = vmatpush1.bf16.msra.mxu0 %v5116_v14  ;;  %2851 = vmatpush1.bf16.msra.mxu1 %v5118_v16  ;;  %v426_v14 = vld [vmem:[#allocation5 + $0xa58] sm:$0xff]  ;;  %v437_v9 = vld [vmem:[#allocation5 + $0xab0] sm:$0xff] }
 0x17d   :  { %2729 = vmatprep.subr.bf16.mxu0 %v5125_v17  ;;  %2852 = vmatprep.subr.bf16.mxu1 %v5127_v18  ;;  %v430_v16 = vld [vmem:[#allocation5 + $0xa78] sm:$0xff]  ;;  %v5180_v17 = vcombine.low %v417_v3, %v421_v4  ;;  %v5182_v18 = vcombine.low %v418_v5, %v422_v6  ;;  %v5197_v25 = vcombine.high %v433_v20, %v437_v9 }
 0x17e   :  { %2759 = vmatprep.mubr.bf16.mxu0 %v6148_v48  ;;  %2882 = vmatprep.mubr.bf16.mxu1 %v6148_v48  ;;  %v5151_v48 = vcombine.high %v386_v34, %v390_v63  ;;  %v5191_v19 = vcombine.high %v426_v14, %v430_v16  ;;  %v449_v34 = vld [vmem:[#allocation5 + $0xb10] sm:$0xff]  ;;  %v5237_v3 = vcombine.high %v473_v61, %v477_v62 }
 0x17f   :  { %v453_v63 = vld [vmem:[#allocation5 + $0xb30] sm:$0xff]  ;;  %v5236_v5 = vcombine.low %v473_v61, %v477_v62  ;;  %v5613_v62 = vld [vmem:[#allocation7 + $0x108] ss:$16 sps:$4 sm:$0xff]  }
 0x180   :  { %2730 = vmatpush1.bf16.msra.mxu0 %v5124_v21  ;;  %2853 = vmatpush1.bf16.msra.mxu1 %v5126_v24  ;;  %v434_v21 = vld [vmem:[#allocation5 + $0xa98] sm:$0xff]  ;;  %v5213_v40 = vcombine.high %v449_v34, %v453_v63  ;;  %v5610_v61 = vld [vmem:[#allocation7 + $0x100] ss:$16 sps:$4 sm:$0xff]  }
 0x181   :  { %2731 = vmatprep.subr.bf16.mxu0 %v5133_v22  ;;  %2854 = vmatprep.subr.bf16.mxu1 %v5135_v23  ;;  %v438_v24 = vld [vmem:[#allocation5 + $0xab8] sm:$0xff]  ;;  %v5188_v22 = vcombine.low %v425_v12, %v429_v13  ;;  %v5190_v23 = vcombine.low %v426_v14, %v430_v16 }
 0x182   :  { %v5199_v26 = vcombine.high %v434_v21, %v438_v24 }
 0x184   :  { %2732 = vmatpush1.bf16.msra.mxu0 %v5132_v30  ;;  %2855 = vmatpush1.bf16.msra.mxu1 %v5134_v39  ;;  %v442_v30 = vld [vmem:[#allocation5 + $0xad8] sm:$0xff] }
 0x185   :  { %2733 = vmatprep.subr.bf16.mxu0 %v5141_v31  ;;  %2856 = vmatprep.subr.bf16.mxu1 %v5143_v32  ;;  %v446_v39 = vld [vmem:[#allocation5 + $0xaf8] sm:$0xff]  ;;  %v5196_v31 = vcombine.low %v433_v20, %v437_v9  ;;  %v5198_v32 = vcombine.low %v434_v21, %v438_v24 }
 0x186   :  { %v5207_v33 = vcombine.high %v442_v30, %v446_v39 }
 0x188   :  { %2734 = vmatpush1.bf16.msra.mxu0 %v5140_v36  ;;  %2857 = vmatpush1.bf16.msra.mxu1 %v5142_v37  ;;  %v450_v36 = vld [vmem:[#allocation5 + $0xb18] sm:$0xff] }
 0x189   :  { %2735 = vmatprep.subr.bf16.mxu0 %v5149_v38  ;;  %2858 = vmatprep.subr.bf16.mxu1 %v5151_v48  ;;  %v454_v37 = vld [vmem:[#allocation5 + $0xb38] sm:$0xff]  ;;  %v5204_v38 = vcombine.low %v441_v27, %v445_v28  ;;  %v5206_v48 = vcombine.low %v442_v30, %v446_v39  ;;  %v5570_v30 = vld [vmem:[#allocation7 + $0x24] ss:$16 sps:$4 sm:$0xff]  }
 0x18a   :  { %v5215_v41 = vcombine.high %v450_v36, %v454_v37  ;;  %v5565_v27 = vld [vmem:[#allocation7 + $0x8] ss:$16 sps:$4 sm:$0xff]   ;;  %v5567_v28 = vld [vmem:[#allocation7 + $0xc] ss:$16 sps:$4 sm:$0xff]  }
 0x18b   :  { %v5573_v39 = vld [vmem:[#allocation7 + $0x2c] ss:$16 sps:$4 sm:$0xff]  }
 0x18c   :  { %2736 = vmatpush1.bf16.msra.mxu0 %v5148_v44  ;;  %2859 = vmatpush1.bf16.msra.mxu1 %v5150_v45  ;;  %v458_v44 = vld [vmem:[#allocation5 + $0xb58] sm:$0xff] }
 0x18d   :  { %2737 = vmatprep.subr.bf16.mxu0 %v5157_v46  ;;  %2860 = vmatprep.subr.bf16.mxu1 %v5159_v47  ;;  %v462_v45 = vld [vmem:[#allocation5 + $0xb78] sm:$0xff]  ;;  %v5212_v46 = vcombine.low %v449_v34, %v453_v63  ;;  %v5214_v47 = vcombine.low %v450_v36, %v454_v37  ;;  %v5574_v34 = vld [vmem:[#allocation7 + $0x40] ss:$16 sps:$4 sm:$0xff]   ;;  %v5582_v36 = vld [vmem:[#allocation7 + $0x64] ss:$16 sps:$4 sm:$0xff]  }
 0x18e   :  { %v5223_v49 = vcombine.high %v458_v44, %v462_v45  ;;  %v5577_v63 = vld [vmem:[#allocation7 + $0x48] ss:$16 sps:$4 sm:$0xff]   ;;  %v5585_v37 = vld [vmem:[#allocation7 + $0x6c] ss:$16 sps:$4 sm:$0xff]  }
 0x190   :  { %2738 = vmatpush1.bf16.msra.mxu0 %v5156_v52  ;;  %2861 = vmatpush1.bf16.msra.mxu1 %v5158_v54  ;;  %v466_v52 = vld [vmem:[#allocation5 + $0xb98] sm:$0xff] }
 0x191   :  { %2739 = vmatprep.subr.bf16.mxu0 %v5165_v56  ;;  %2862 = vmatprep.subr.bf16.mxu1 %v5167_v57  ;;  %v470_v54 = vld [vmem:[#allocation5 + $0xbb8] sm:$0xff]  ;;  %v5220_v56 = vcombine.low %v457_v42, %v461_v43  ;;  %v5222_v57 = vcombine.low %v458_v44, %v462_v45  ;;  %v5586_v42 = vld [vmem:[#allocation7 + $0x80] ss:$16 sps:$4 sm:$0xff]   ;;  %v5594_v44 = vld [vmem:[#allocation7 + $0xa4] ss:$16 sps:$4 sm:$0xff]  }
 0x192   :  { %v5231_v60 = vcombine.high %v466_v52, %v470_v54  ;;  %v5589_v43 = vld [vmem:[#allocation7 + $0x88] ss:$16 sps:$4 sm:$0xff]   ;;  %v5597_v45 = vld [vmem:[#allocation7 + $0xac] ss:$16 sps:$4 sm:$0xff]  }
 0x194   :  { %2740 = vmatpush1.bf16.msra.mxu0 %v5164_v0  ;;  %2863 = vmatpush1.bf16.msra.mxu1 %v5166_v1  ;;  %v474_v0 = vld [vmem:[#allocation5 + $0xbd8] sm:$0xff] }
 0x195   :  { %2741 = vmatprep.subr.bf16.mxu0 %v5173_v2  ;;  %2864 = vmatprep.subr.bf16.mxu1 %v5175_v29  ;;  %v478_v1 = vld [vmem:[#allocation5 + $0xbf8] sm:$0xff]  ;;  %v5228_v2 = vcombine.low %v465_v50, %v469_v51  ;;  %v5230_v29 = vcombine.low %v466_v52, %v470_v54  ;;  %v5598_v50 = vld [vmem:[#allocation7 + $0xc0] ss:$16 sps:$4 sm:$0xff]   ;;  %v5606_v52 = vld [vmem:[#allocation7 + $0xe4] ss:$16 sps:$4 sm:$0xff]  }
 0x196   :  { %v5239_v4 = vcombine.high %v474_v0, %v478_v1  ;;  %v5238_v6 = vcombine.low %v474_v0, %v478_v1  ;;  %v5601_v51 = vld [vmem:[#allocation7 + $0xc8] ss:$16 sps:$4 sm:$0xff]   ;;  %v5609_v54 = vld [vmem:[#allocation7 + $0xec] ss:$16 sps:$4 sm:$0xff]   ;;  %v5618_v0 = vld [vmem:[#allocation7 + $0x124] ss:$16 sps:$4 sm:$0xff]  }
 0x197   :  { %v5621_v1 = vld [vmem:[#allocation7 + $0x12c] ss:$16 sps:$4 sm:$0xff]  }
 0x198   :  { %2742 = vmatpush1.bf16.msra.mxu0 %v5172_v7  ;;  %2865 = vmatpush1.bf16.msra.mxu1 %v5174_v8 }
 0x199   :  { %2743 = vmatprep.subr.bf16.mxu0 %v5181_v10  ;;  %2866 = vmatprep.subr.bf16.mxu1 %v5183_v11 }
 0x19c   :  { %2744 = vmatpush1.bf16.msra.mxu0 %v5180_v17  ;;  %2867 = vmatpush1.bf16.msra.mxu1 %v5182_v18 }
 0x19d   :  { %2745 = vmatprep.subr.bf16.mxu0 %v5189_v59  ;;  %2868 = vmatprep.subr.bf16.mxu1 %v5191_v19 }
 0x1a0   :  { %2746 = vmatpush1.bf16.msra.mxu0 %v5188_v22  ;;  %2869 = vmatpush1.bf16.msra.mxu1 %v5190_v23 }
 0x1a1   :  { %2747 = vmatprep.subr.bf16.mxu0 %v5197_v25  ;;  %2870 = vmatprep.subr.bf16.mxu1 %v5199_v26  ;;  %v5562_v25 = vld [vmem:[#allocation7] ss:$16 sps:$4 sm:$0xff]   ;;  %v5564_v26 = vld [vmem:[#allocation7 + $0x4] ss:$16 sps:$4 sm:$0xff]  }
 0x1a4   :  { %2748 = vmatpush1.bf16.msra.mxu0 %v5196_v31  ;;  %2871 = vmatpush1.bf16.msra.mxu1 %v5198_v32  ;;  %v5568_v31 = vld [vmem:[#allocation7 + $0x20] ss:$16 sps:$4 sm:$0xff]   ;;  %v5571_v32 = vld [vmem:[#allocation7 + $0x28] ss:$16 sps:$4 sm:$0xff]  }
 0x1a5   :  { %2749 = vmatprep.subr.bf16.mxu0 %v5205_v35  ;;  %2872 = vmatprep.subr.bf16.mxu1 %v5207_v33  ;;  %v5576_v35 = vld [vmem:[#allocation7 + $0x44] ss:$16 sps:$4 sm:$0xff]   ;;  %v5579_v33 = vld [vmem:[#allocation7 + $0x4c] ss:$16 sps:$4 sm:$0xff]  }
 0x1a8   :  { %2750 = vmatpush1.bf16.msra.mxu0 %v5204_v38  ;;  %2873 = vmatpush1.bf16.msra.mxu1 %v5206_v48  ;;  %v5580_v38 = vld [vmem:[#allocation7 + $0x60] ss:$16 sps:$4 sm:$0xff]   ;;  %v5583_v48 = vld [vmem:[#allocation7 + $0x68] ss:$16 sps:$4 sm:$0xff]  }
 0x1a9   :  { %2751 = vmatprep.subr.bf16.mxu0 %v5213_v40  ;;  %2874 = vmatprep.subr.bf16.mxu1 %v5215_v41  ;;  %v5588_v40 = vld [vmem:[#allocation7 + $0x84] ss:$16 sps:$4 sm:$0xff]   ;;  %v5591_v41 = vld [vmem:[#allocation7 + $0x8c] ss:$16 sps:$4 sm:$0xff]  }
 0x1ac   :  { %2752 = vmatpush1.bf16.msra.mxu0 %v5212_v46  ;;  %2875 = vmatpush1.bf16.msra.mxu1 %v5214_v47  ;;  %v5592_v46 = vld [vmem:[#allocation7 + $0xa0] ss:$16 sps:$4 sm:$0xff]   ;;  %v5595_v47 = vld [vmem:[#allocation7 + $0xa8] ss:$16 sps:$4 sm:$0xff]  }
 0x1ad   :  { %2753 = vmatprep.subr.bf16.mxu0 %v5221_v15  ;;  %2876 = vmatprep.subr.bf16.mxu1 %v5223_v49  ;;  %v5600_v15 = vld [vmem:[#allocation7 + $0xc4] ss:$16 sps:$4 sm:$0xff]   ;;  %v5603_v49 = vld [vmem:[#allocation7 + $0xcc] ss:$16 sps:$4 sm:$0xff]  }
 0x1b0   :  { %2754 = vmatpush1.bf16.msra.mxu0 %v5220_v56  ;;  %2877 = vmatpush1.bf16.msra.mxu1 %v5222_v57  ;;  %v5604_v56 = vld [vmem:[#allocation7 + $0xe0] ss:$16 sps:$4 sm:$0xff]   ;;  %v5607_v57 = vld [vmem:[#allocation7 + $0xe8] ss:$16 sps:$4 sm:$0xff]  }
 0x1b1   :  { %2755 = vmatprep.subr.bf16.mxu0 %v5229_v58  ;;  %2878 = vmatprep.subr.bf16.mxu1 %v5231_v60  ;;  %v5612_v58 = vld [vmem:[#allocation7 + $0x104] ss:$16 sps:$4 sm:$0xff]   ;;  %v5615_v60 = vld [vmem:[#allocation7 + $0x10c] ss:$16 sps:$4 sm:$0xff]  }
 0x1b4   :  { %2756 = vmatpush1.bf16.msra.mxu0 %v5228_v2  ;;  %2879 = vmatpush1.bf16.msra.mxu1 %v5230_v29  ;;  %v5616_v2 = vld [vmem:[#allocation7 + $0x120] ss:$16 sps:$4 sm:$0xff]   ;;  %v5619_v29 = vld [vmem:[#allocation7 + $0x128] ss:$16 sps:$4 sm:$0xff]  }
 0x1b5   :  { %2757 = vmatprep.subr.bf16.mxu0 %v5237_v3  ;;  %2880 = vmatprep.subr.bf16.mxu1 %v5239_v4  ;;  %v5624_v3 = vld [vmem:[#allocation7 + $0x144] ss:$16 sps:$4 sm:$0xff]   ;;  %v5627_v4 = vld [vmem:[#allocation7 + $0x14c] ss:$16 sps:$4 sm:$0xff]  }
 0x1b8   :  { %2758 = vmatpush1.bf16.msra.mxu0 %v5236_v5  ;;  %2881 = vmatpush1.bf16.msra.mxu1 %v5238_v6  ;;  %v5622_v5 = vld [vmem:[#allocation7 + $0x140] ss:$16 sps:$4 sm:$0xff]   ;;  %v5625_v6 = vld [vmem:[#allocation7 + $0x148] ss:$16 sps:$4 sm:$0xff]  }
 0x1b9   :  { %4470 = vmatprep.subr.bf16.mxu0 %v5564_v26  ;;  %4634 = vmatprep.subr.bf16.mxu1 %v5567_v28 }
 0x1bb   :  { %2760 = vmatmul.mubr.bf16.vlgmr.msra.gmra.mrb[4].mxu0 %v6156_v55  ;;  %2883 = vmatmul.mubr.bf16.vlgmr.msra.gmra.mrb[4].mxu1 %v6156_v55 }
 0x1bc   :  { %4471 = vmatpush1.bf16.msra.mxu0 %v5562_v25  ;;  %4635 = vmatpush1.bf16.msra.mxu1 %v5565_v27 }
 0x1bd   :  { %4472 = vmatprep.subr.bf16.mxu0 %v5570_v30  ;;  %4636 = vmatprep.subr.bf16.mxu1 %v5573_v39 }
 0x1c0   :  { %4473 = vmatpush1.bf16.msra.mxu0 %v5568_v31  ;;  %4637 = vmatpush1.bf16.msra.mxu1 %v5571_v32 }
 0x1c1   :  { %4474 = vmatprep.subr.bf16.mxu0 %v5576_v35  ;;  %4638 = vmatprep.subr.bf16.mxu1 %v5579_v33 }
 0x1c4   :  { %4475 = vmatpush1.bf16.msra.mxu0 %v5574_v34  ;;  %4639 = vmatpush1.bf16.msra.mxu1 %v5577_v63 }
 0x1c5   :  { %4476 = vmatprep.subr.bf16.mxu0 %v5582_v36  ;;  %4640 = vmatprep.subr.bf16.mxu1 %v5585_v37 }
 0x1c8   :  { %4477 = vmatpush1.bf16.msra.mxu0 %v5580_v38  ;;  %4641 = vmatpush1.bf16.msra.mxu1 %v5583_v48  ;;  %v5640_v38 = vld [vmem:[#allocation7 + $0x1a0] ss:$16 sps:$4 sm:$0xff]   ;;  %v5642_v48 = vld [vmem:[#allocation7 + $0x1a4] ss:$16 sps:$4 sm:$0xff]  }
 0x1c9   :  { %4478 = vmatprep.subr.bf16.mxu0 %v5588_v40  ;;  %4642 = vmatprep.subr.bf16.mxu1 %v5591_v41  ;;  %v5643_v40 = vld [vmem:[#allocation7 + $0x1a8] ss:$16 sps:$4 sm:$0xff]   ;;  %v5645_v41 = vld [vmem:[#allocation7 + $0x1ac] ss:$16 sps:$4 sm:$0xff]  }
 0x1cc   :  { %4479 = vmatpush1.bf16.msra.mxu0 %v5586_v42  ;;  %4643 = vmatpush1.bf16.msra.mxu1 %v5589_v43  ;;  %v5648_v42 = vld [vmem:[#allocation7 + $0x1c4] ss:$16 sps:$4 sm:$0xff]   ;;  %v5651_v43 = vld [vmem:[#allocation7 + $0x1cc] ss:$16 sps:$4 sm:$0xff]  }
 0x1cd   :  { %4480 = vmatprep.subr.bf16.mxu0 %v5594_v44  ;;  %4644 = vmatprep.subr.bf16.mxu1 %v5597_v45  ;;  %v5649_v44 = vld [vmem:[#allocation7 + $0x1c8] ss:$16 sps:$4 sm:$0xff]   ;;  %v5654_v45 = vld [vmem:[#allocation7 + $0x1e4] ss:$16 sps:$4 sm:$0xff]  }
 0x1ce   :  { %v6172_v7 = vpop.f32.mrb[0].mxu0  ;;  %v6176_v10 = vpop.f32.mrb[0].mxu1 }
 0x1cf   :  { %v2891_v8 = vmul.f32 %v6172_v7, %v6172_v7  ;;  %v6178_v11 = vpop.f32.mrb[1].mxu0  ;;  %v2893_v12 = vmul.f32 %v6176_v10, %v6176_v10  ;;  %v6184_v14 = vpop.f32.mrb[1].mxu1 }
 0x1d0   :  { %v2892_v13 = vmul.f32 %v6178_v11, %v6178_v11  ;;  %v2519_v16 = vpop.f32.mrb[2].mxu0  ;;  %v2642_v17 = vpop.f32.mrb[2].mxu1  ;;  %v2894_v19 = vmul.f32 %v6184_v14, %v6184_v14  ;;  %4481 = vmatpush1.bf16.msra.mxu0 %v5592_v46  ;;  %4645 = vmatpush1.bf16.msra.mxu1 %v5595_v47  ;;  %v5657_v46 = vld [vmem:[#allocation7 + $0x1ec] ss:$16 sps:$4 sm:$0xff]   ;;  %v5652_v47 = vld [vmem:[#allocation7 + $0x1e0] ss:$16 sps:$4 sm:$0xff]  }
 0x1d1   :  { %v2900_v55 = vsel %vm2899_vm0, %v2891_v8, 0.0  ;;  %v2520_v18 = vpop.f32.mrb[3].mxu0  ;;  %v2643_v20 = vpop.f32.mrb[3].mxu1  ;;  %v2903_v21 = vsel %vm2899_vm0, %v2893_v12, 0.0  ;;  %4482 = vmatprep.subr.bf16.mxu0 %v5600_v15  ;;  %4646 = vmatprep.subr.bf16.mxu1 %v5603_v49  ;;  %v5630_v8 = vld [vmem:[#allocation7 + $0x164] ss:$16 sps:$4 sm:$0xff]  }
 0x1d2   :  { %v2901_v59 = vsel %vm2899_vm0, %v2892_v13, 0.0  ;;  %v2905_v22 = vsel %vm2899_vm0, %v2894_v19, 0.0  ;;  %v5633_v12 = vld [vmem:[#allocation7 + $0x16c] ss:$16 sps:$4 sm:$0xff]   ;;  %v5628_v13 = vld [vmem:[#allocation7 + $0x160] ss:$16 sps:$4 sm:$0xff]  }
 0x1d3   :  { %v2902_v9 = vadd.f32 %v2901_v59, %v2900_v55  ;;  %v5631_v16 = vld [vmem:[#allocation7 + $0x168] ss:$16 sps:$4 sm:$0xff]   ;;  %v5636_v55 = vld [vmem:[#allocation7 + $0x184] ss:$16 sps:$4 sm:$0xff]   ;;  %v5639_v17 = vld [vmem:[#allocation7 + $0x18c] ss:$16 sps:$4 sm:$0xff]  }
 0x1d4   :  { %4483 = vmatpush1.bf16.msra.mxu0 %v5598_v50  ;;  %4647 = vmatpush1.bf16.msra.mxu1 %v5601_v51  ;;  %v5634_v18 = vld [vmem:[#allocation7 + $0x180] ss:$16 sps:$4 sm:$0xff]   ;;  %v5637_v59 = vld [vmem:[#allocation7 + $0x188] ss:$16 sps:$4 sm:$0xff]   ;;  %v5660_v49 = vld [vmem:[#allocation7 + $0x204] ss:$16 sps:$4 sm:$0xff]  }
 0x1d5   :  { %v2904_v24 = vadd.f32 %v2903_v21, %v2902_v9  ;;  %4484 = vmatprep.subr.bf16.mxu0 %v5606_v52  ;;  %4648 = vmatprep.subr.bf16.mxu1 %v5609_v54  ;;  %v5655_v15 = vld [vmem:[#allocation7 + $0x1e8] ss:$16 sps:$4 sm:$0xff]   ;;  %v5663_v50 = vld [vmem:[#allocation7 + $0x20c] ss:$16 sps:$4 sm:$0xff]  }
 0x1d7   :  { %v6192_v23 = vadd.f32 %v2905_v22, %v2904_v24 }
 0x1d8   :  { %4485 = vmatpush1.bf16.msra.mxu0 %v5604_v56  ;;  %4649 = vmatpush1.bf16.msra.mxu1 %v5607_v57 }
 0x1d9   :  { %4486 = vmatprep.subr.bf16.mxu0 %v5612_v58  ;;  %4650 = vmatprep.subr.bf16.mxu1 %v5615_v60 }
 0x1dc   :  { %4487 = vmatpush1.bf16.msra.mxu0 %v5610_v61  ;;  %4651 = vmatpush1.bf16.msra.mxu1 %v5613_v62 }
 0x1dd   :  { %4488 = vmatprep.subr.bf16.mxu0 %v5618_v0  ;;  %4652 = vmatprep.subr.bf16.mxu1 %v5621_v1 }
 0x1e0   :  { %4489 = vmatpush1.bf16.msra.mxu0 %v5616_v2  ;;  %4653 = vmatpush1.bf16.msra.mxu1 %v5619_v29  ;;  %v5658_v2 = vld [vmem:[#allocation7 + $0x200] ss:$16 sps:$4 sm:$0xff]   ;;  %v5661_v29 = vld [vmem:[#allocation7 + $0x208] ss:$16 sps:$4 sm:$0xff]  }
 0x1e1   :  { %4490 = vmatprep.subr.bf16.mxu0 %v5624_v3  ;;  %4654 = vmatprep.subr.bf16.mxu1 %v5627_v4  ;;  %v5667_v4 = vld [vmem:[#allocation7 + $0x228] ss:$16 sps:$4 sm:$0xff]  }
 0x1e4   :  { %4491 = vmatpush1.bf16.msra.mxu0 %v5622_v5  ;;  %4655 = vmatpush1.bf16.msra.mxu1 %v5625_v6  ;;  %v5672_v5 = vld [vmem:[#allocation7 + $0x244] ss:$16 sps:$4 sm:$0xff]   ;;  %v5675_v6 = vld [vmem:[#allocation7 + $0x24c] ss:$16 sps:$4 sm:$0xff]  }
 0x1e5   :  { %4492 = vmatprep.subr.bf16.mxu0 %v5630_v8  ;;  %4656 = vmatprep.subr.bf16.mxu1 %v5633_v12  ;;  %v5670_v8 = vld [vmem:[#allocation7 + $0x240] ss:$16 sps:$4 sm:$0xff]   ;;  %v5673_v12 = vld [vmem:[#allocation7 + $0x248] ss:$16 sps:$4 sm:$0xff]  }
 0x1e8   :  { %4493 = vmatpush1.bf16.msra.mxu0 %v5628_v13  ;;  %4657 = vmatpush1.bf16.msra.mxu1 %v5631_v16  ;;  %v5678_v13 = vld [vmem:[#allocation7 + $0x264] ss:$16 sps:$4 sm:$0xff]   ;;  %v5681_v16 = vld [vmem:[#allocation7 + $0x26c] ss:$16 sps:$4 sm:$0xff]  }
 0x1e9   :  { %4494 = vmatprep.subr.bf16.mxu0 %v5636_v55  ;;  %4658 = vmatprep.subr.bf16.mxu1 %v5639_v17  ;;  %v5676_v55 = vld [vmem:[#allocation7 + $0x260] ss:$16 sps:$4 sm:$0xff]   ;;  %v5679_v17 = vld [vmem:[#allocation7 + $0x268] ss:$16 sps:$4 sm:$0xff]  }
 0x1ec   :  { %4495 = vmatpush1.bf16.msra.mxu0 %v5634_v18  ;;  %4659 = vmatpush1.bf16.msra.mxu1 %v5637_v59  ;;  %v5684_v18 = vld [vmem:[#allocation7 + $0x284] ss:$16 sps:$4 sm:$0xff]   ;;  %v5687_v59 = vld [vmem:[#allocation7 + $0x28c] ss:$16 sps:$4 sm:$0xff]  }
 0x1ed   :  { %4496 = vmatprep.subr.bf16.mxu0 %v5642_v48  ;;  %4660 = vmatprep.subr.bf16.mxu1 %v5645_v41  ;;  %v5715_v48 = vld [vmem:[#allocation7 + $0x328] ss:$16 sps:$4 sm:$0xff]   ;;  %v5723_v41 = vld [vmem:[#allocation7 + $0x34c] ss:$16 sps:$4 sm:$0xff]  }
 0x1f0   :  { %4497 = vmatpush1.bf16.msra.mxu0 %v5640_v38  ;;  %4661 = vmatpush1.bf16.msra.mxu1 %v5643_v40  ;;  %v5712_v38 = vld [vmem:[#allocation7 + $0x320] ss:$16 sps:$4 sm:$0xff]   ;;  %v5720_v40 = vld [vmem:[#allocation7 + $0x344] ss:$16 sps:$4 sm:$0xff]  }
 0x1f1   :  { %4498 = vmatprep.subr.bf16.mxu0 %v5648_v42  ;;  %4662 = vmatprep.subr.bf16.mxu1 %v5651_v43  ;;  %v5718_v42 = vld [vmem:[#allocation7 + $0x340] ss:$16 sps:$4 sm:$0xff]   ;;  %v5721_v43 = vld [vmem:[#allocation7 + $0x348] ss:$16 sps:$4 sm:$0xff]  }
 0x1f4   :  { %4663 = vmatpush1.bf16.msra.mxu1 %v5649_v44  ;;  %v5729_v44 = vld [vmem:[#allocation7 + $0x36c] ss:$16 sps:$4 sm:$0xff]  }
 0x1f5   :  { %4664 = vmatprep.subr.bf16.mxu1 %v5657_v46  ;;  %v5727_v46 = vld [vmem:[#allocation7 + $0x368] ss:$16 sps:$4 sm:$0xff]  }
 0x1f8   :  { %4665 = vmatpush1.bf16.msra.mxu1 %v5655_v15  ;;  %v5735_v15 = vld [vmem:[#allocation7 + $0x38c] ss:$16 sps:$4 sm:$0xff]  }
 0x1f9   :  { %4675 = vmatprep.subr.bf16.mxu1 %v5663_v50  ;;  %v5733_v50 = vld [vmem:[#allocation7 + $0x388] ss:$16 sps:$4 sm:$0xff]  }
 0x28e   :  { %v2761_v19 = vpop.f32.mrb[4].mxu0  ;;  %v2884_v9 = vpop.f32.mrb[4].mxu1 }
 0x28f   :  { %v2895_v20 = vmul.f32 %v2761_v19, %v2761_v19  ;;  %v2763_v21 = vpop.f32.mrb[5].mxu0  ;;  %v2886_v22 = vpop.f32.mrb[5].mxu1  ;;  %v2897_v27 = vmul.f32 %v2884_v9, %v2884_v9 }
 0x290   :  { %v2896_v24 = vmul.f32 %v2763_v21, %v2763_v21  ;;  %v2765_v25 = vpop.f32.mrb[6].mxu0  ;;  %v2888_v28 = vpop.f32.mrb[6].mxu1  ;;  %v2898_v35 = vmul.f32 %v2886_v22, %v2886_v22 }
 0x291   :  { %v2907_v26 = vsel %vm2899_vm0, %v2895_v20, 0.0  ;;  %v2766_v30 = vpop.f32.mrb[7].mxu0  ;;  %v2889_v32 = vpop.f32.mrb[7].mxu1  ;;  %v2911_v34 = vsel %vm2899_vm0, %v2897_v27, 0.0  ;;  %v5685_v20 = vld [vmem:[#allocation7 + $0x288] ss:$16 sps:$4 sm:$0xff]  }
 0x292   :  { %v2908_v39 = vadd.f32 %v2907_v26, %v6192_v23  ;;  %v2909_v31 = vsel %vm2899_vm0, %v2896_v24, 0.0  ;;  %v2913_v36 = vsel %vm2899_vm0, %v2898_v35, 0.0  ;;  %v5646_v23 = vld [vmem:[#allocation7 + $0x1c0] ss:$16 sps:$4 sm:$0xff]   ;;  %v5696_v25 = vld [vmem:[#allocation7 + $0x2c4] ss:$16 sps:$4 sm:$0xff]  }
 0x293   :  { %4499 = vmatpush1.bf16.msra.mxu0 %v5646_v23  ;;  %v5688_v24 = vld [vmem:[#allocation7 + $0x2a0] ss:$16 sps:$4 sm:$0xff]   ;;  %v5699_v26 = vld [vmem:[#allocation7 + $0x2cc] ss:$16 sps:$4 sm:$0xff]   ;;  %v5697_v28 = vld [vmem:[#allocation7 + $0x2c8] ss:$16 sps:$4 sm:$0xff]  }
 0x294   :  { %v2910_v33 = vadd.f32 %v2909_v31, %v2908_v39  ;;  %4500 = vmatprep.subr.bf16.mxu0 %v5654_v45  ;;  %v5694_v27 = vld [vmem:[#allocation7 + $0x2c0] ss:$16 sps:$4 sm:$0xff]   ;;  %v5702_v30 = vld [vmem:[#allocation7 + $0x2e4] ss:$16 sps:$4 sm:$0xff]   ;;  %v5705_v39 = vld [vmem:[#allocation7 + $0x2ec] ss:$16 sps:$4 sm:$0xff]  }
 0x295   :  { %v5700_v31 = vld [vmem:[#allocation7 + $0x2e0] ss:$16 sps:$4 sm:$0xff]   ;;  %v5703_v32 = vld [vmem:[#allocation7 + $0x2e8] ss:$16 sps:$4 sm:$0xff]   ;;  %v5708_v35 = vld [vmem:[#allocation7 + $0x304] ss:$16 sps:$4 sm:$0xff]  }
 0x296   :  { %v2912_v63 = vadd.f32 %v2911_v34, %v2910_v33  ;;  %v5711_v33 = vld [vmem:[#allocation7 + $0x30c] ss:$16 sps:$4 sm:$0xff]   ;;  %v5706_v34 = vld [vmem:[#allocation7 + $0x300] ss:$16 sps:$4 sm:$0xff]   ;;  %v5726_v23 = vld [vmem:[#allocation7 + $0x364] ss:$16 sps:$4 sm:$0xff]  }
 0x297   :  { %4501 = vmatpush1.bf16.msra.mxu0 %v5652_v47  ;;  %v5724_v45 = vld [vmem:[#allocation7 + $0x360] ss:$16 sps:$4 sm:$0xff]   ;;  %v5732_v47 = vld [vmem:[#allocation7 + $0x384] ss:$16 sps:$4 sm:$0xff]  }
 0x298   :  { %v2914_v37 = vadd.f32 %v2913_v36, %v2912_v63  ;;  %4511 = vmatprep.subr.bf16.mxu0 %v5660_v49  ;;  %v5709_v63 = vld [vmem:[#allocation7 + $0x308] ss:$16 sps:$4 sm:$0xff]   ;;  %v5714_v36 = vld [vmem:[#allocation7 + $0x324] ss:$16 sps:$4 sm:$0xff]   ;;  %v5730_v49 = vld [vmem:[#allocation7 + $0x380] ss:$16 sps:$4 sm:$0xff]  }
 0x29a   :  { %2915 = vadd.xlane.f32.xlu0 %v2914_v37  ;;  %v5717_v37 = vld [vmem:[#allocation7 + $0x32c] ss:$16 sps:$4 sm:$0xff]  }
 0x327   :  { %v2916_v51 = vpop.xlane.xlu0 %2915 }
 0x328   :  { %5946 = vrsqrt.f32 %v2916_v51  ;;  %v5738_v51 = vld [vmem:[#allocation7 + $0x3a4] ss:$16 sps:$4 sm:$0xff]  }
 0x332   :  { %v5947_v52 = vpop.eup %5946 }
 0x333   :  { %v2919_v54 = vmul.f32 %v5947_v52, %v6178_v11  ;;  %v2918_v56 = vmul.f32 %v5947_v52, %v6172_v7  ;;  %v2921_v57 = vmul.f32 %v5947_v52, %v6184_v14  ;;  %v6203_v58 = vmul.f32 %v5947_v52, %v6176_v10  ;;  %v5666_v7 = vld [vmem:[#allocation7 + $0x224] ss:$16 sps:$4 sm:$0xff]   ;;  %v5669_v11 = vld [vmem:[#allocation7 + $0x22c] ss:$16 sps:$4 sm:$0xff]   ;;  %v5664_v14 = vld [vmem:[#allocation7 + $0x220] ss:$16 sps:$4 sm:$0xff]  }
 0x334   :  { %v6205_v60 = vmul.f32 %v5947_v52, %v2763_v21  ;;  %v6207_v61 = vmul.f32 %v5947_v52, %v2761_v19  ;;  %v6209_v62 = vmul.f32 %v5947_v52, %v2886_v22  ;;  %v6211_v0 = vmul.f32 %v5947_v52, %v2884_v9  ;;  %v5682_v19 = vld [vmem:[#allocation7 + $0x280] ss:$16 sps:$4 sm:$0xff]   ;;  %v5690_v9 = vld [vmem:[#allocation7 + $0x2a4] ss:$16 sps:$4 sm:$0xff]   ;;  %v5693_v21 = vld [vmem:[#allocation7 + $0x2ac] ss:$16 sps:$4 sm:$0xff]  }
 0x335   :  { %v2927_v1 = vpack.c.bf16 %v2919_v54, %v2919_v54  ;;  %v2926_v3 = vpack.c.bf16 %v2918_v56, %v2918_v56  ;;  %v2929_v10 = vpack.c.bf16 %v2921_v57, %v2921_v57  ;;  %v5691_v22 = vld [vmem:[#allocation7 + $0x2a8] ss:$16 sps:$4 sm:$0xff]   ;;  %v5741_v52 = vld [vmem:[#allocation7 + $0x3ac] ss:$16 sps:$4 sm:$0xff]   ;;  %v5736_v54 = vld [vmem:[#allocation7 + $0x3a0] ss:$16 sps:$4 sm:$0xff]  }
 0x336   :  { %v5739_v56 = vld [vmem:[#allocation7 + $0x3a8] ss:$16 sps:$4 sm:$0xff]   ;;  %v5744_v57 = vld [vmem:[#allocation7 + $0x3c4] ss:$16 sps:$4 sm:$0xff]  }
 0x337   :  { %4502 = vmatprep.mubr.bf16.mxu0 %v2927_v1  ;;  %4666 = vmatprep.mubr.bf16.mxu1 %v2927_v1  ;;  %v5747_v1 = vld [vmem:[#allocation7 + $0x3cc] ss:$16 sps:$4 sm:$0xff]  }
 0x338   :  { %4503 = vmatmul.mubr.bf16.vlgmr.msra.gmra.mrb[8].mxu0 %v2926_v3  ;;  %4667 = vmatmul.mubr.bf16.vlgmr.msra.gmra.mrb[8].mxu1 %v2926_v3  ;;  %v5750_v3 = vld [vmem:[#allocation7 + $0x3e4] ss:$16 sps:$4 sm:$0xff]  }
 0x339   :  { %4512 = vmatpush1.bf16.msra.mxu0 %v5658_v2  ;;  %4676 = vmatpush1.bf16.msra.mxu1 %v5661_v29  ;;  %v5742_v2 = vld [vmem:[#allocation7 + $0x3c0] ss:$16 sps:$4 sm:$0xff]   ;;  %v5745_v29 = vld [vmem:[#allocation7 + $0x3c8] ss:$16 sps:$4 sm:$0xff]  }
 0x33a   :  { %4543 = vmatprep.mubr.bf16.mxu0 %v2929_v10  ;;  %4707 = vmatprep.mubr.bf16.mxu1 %v2929_v10  ;;  %v5751_v10 = vld [vmem:[#allocation7 + $0x3e8] ss:$16 sps:$4 sm:$0xff]  }
 0x33b   :  { %4513 = vmatprep.subr.bf16.mxu0 %v5666_v7  ;;  %4677 = vmatprep.subr.bf16.mxu1 %v5669_v11  ;;  %v5753_v7 = vld [vmem:[#allocation7 + $0x3ec] ss:$16 sps:$4 sm:$0xff]   ;;  %v5748_v11 = vld [vmem:[#allocation7 + $0x3e0] ss:$16 sps:$4 sm:$0xff]  }
 0x33d   :  { %4514 = vmatpush1.bf16.msra.mxu0 %v5664_v14  ;;  %4678 = vmatpush1.bf16.msra.mxu1 %v5667_v4  ;;  %v5756_v14 = vld [vmem:[#allocation7 + $0x404] ss:$16 sps:$4 sm:$0xff]   ;;  %v5759_v4 = vld [vmem:[#allocation7 + $0x40c] ss:$16 sps:$4 sm:$0xff]  }
 0x33e   :  { %4515 = vmatprep.subr.bf16.mxu0 %v5672_v5  ;;  %4679 = vmatprep.subr.bf16.mxu1 %v5675_v6  ;;  %v5754_v5 = vld [vmem:[#allocation7 + $0x400] ss:$16 sps:$4 sm:$0xff]   ;;  %v2928_v6 = vpack.c.bf16 %v6203_v58, %v6203_v58  ;;  %v5771_v58 = vld [vmem:[#allocation7 + $0x44c] ss:$16 sps:$4 sm:$0xff]  }
 0x341   :  { %4516 = vmatpush1.bf16.msra.mxu0 %v5670_v8  ;;  %4680 = vmatpush1.bf16.msra.mxu1 %v5673_v12  ;;  %v5757_v8 = vld [vmem:[#allocation7 + $0x408] ss:$16 sps:$4 sm:$0xff]   ;;  %v2931_v12 = vpack.c.bf16 %v6205_v60, %v6205_v60  ;;  %v5774_v60 = vld [vmem:[#allocation7 + $0x464] ss:$16 sps:$4 sm:$0xff]  }
 0x342   :  { %4517 = vmatprep.subr.bf16.mxu0 %v5678_v13  ;;  %4681 = vmatprep.subr.bf16.mxu1 %v5681_v16  ;;  %v5762_v13 = vld [vmem:[#allocation7 + $0x424] ss:$16 sps:$4 sm:$0xff]   ;;  %v5765_v16 = vld [vmem:[#allocation7 + $0x42c] ss:$16 sps:$4 sm:$0xff]  }
 0x345   :  { %4518 = vmatpush1.bf16.msra.mxu0 %v5676_v55  ;;  %4682 = vmatpush1.bf16.msra.mxu1 %v5679_v17  ;;  %v5760_v55 = vld [vmem:[#allocation7 + $0x420] ss:$16 sps:$4 sm:$0xff]   ;;  %v5763_v17 = vld [vmem:[#allocation7 + $0x428] ss:$16 sps:$4 sm:$0xff]  }
 0x346   :  { %4519 = vmatprep.subr.bf16.mxu0 %v5684_v18  ;;  %4683 = vmatprep.subr.bf16.mxu1 %v5687_v59  ;;  %v5768_v18 = vld [vmem:[#allocation7 + $0x444] ss:$16 sps:$4 sm:$0xff]   ;;  %v5766_v59 = vld [vmem:[#allocation7 + $0x440] ss:$16 sps:$4 sm:$0xff]  }
 0x349   :  { %4520 = vmatpush1.bf16.msra.mxu0 %v5682_v19  ;;  %4684 = vmatpush1.bf16.msra.mxu1 %v5685_v20  ;;  %v5769_v19 = vld [vmem:[#allocation7 + $0x448] ss:$16 sps:$4 sm:$0xff]   ;;  %v5777_v20 = vld [vmem:[#allocation7 + $0x46c] ss:$16 sps:$4 sm:$0xff]  }
 0x34a   :  { %4521 = vmatprep.subr.bf16.mxu0 %v5690_v9  ;;  %4685 = vmatprep.subr.bf16.mxu1 %v5693_v21  ;;  %v5772_v9 = vld [vmem:[#allocation7 + $0x460] ss:$16 sps:$4 sm:$0xff]   ;;  %v5775_v21 = vld [vmem:[#allocation7 + $0x468] ss:$16 sps:$4 sm:$0xff]  }
 0x34d   :  { %4522 = vmatpush1.bf16.msra.mxu0 %v5688_v24  ;;  %4686 = vmatpush1.bf16.msra.mxu1 %v5691_v22  ;;  %v5780_v24 = vld [vmem:[#allocation7 + $0x484] ss:$16 sps:$4 sm:$0xff]   ;;  %v5783_v22 = vld [vmem:[#allocation7 + $0x48c] ss:$16 sps:$4 sm:$0xff]  }
 0x34e   :  { %4523 = vmatprep.subr.bf16.mxu0 %v5696_v25  ;;  %4687 = vmatprep.subr.bf16.mxu1 %v5699_v26  ;;  %v5778_v25 = vld [vmem:[#allocation7 + $0x480] ss:$16 sps:$4 sm:$0xff]   ;;  %v5781_v26 = vld [vmem:[#allocation7 + $0x488] ss:$16 sps:$4 sm:$0xff]  }
 0x351   :  { %4524 = vmatpush1.bf16.msra.mxu0 %v5694_v27  ;;  %4688 = vmatpush1.bf16.msra.mxu1 %v5697_v28  ;;  %v5786_v27 = vld [vmem:[#allocation7 + $0x4a4] ss:$16 sps:$4 sm:$0xff]   ;;  %v5789_v28 = vld [vmem:[#allocation7 + $0x4ac] ss:$16 sps:$4 sm:$0xff]  }
 0x352   :  { %4525 = vmatprep.subr.bf16.mxu0 %v5702_v30  ;;  %4689 = vmatprep.subr.bf16.mxu1 %v5705_v39  ;;  %v5784_v30 = vld [vmem:[#allocation7 + $0x4a0] ss:$16 sps:$4 sm:$0xff]   ;;  %v5787_v39 = vld [vmem:[#allocation7 + $0x4a8] ss:$16 sps:$4 sm:$0xff]  }
 0x355   :  { %4526 = vmatpush1.bf16.msra.mxu0 %v5700_v31  ;;  %4690 = vmatpush1.bf16.msra.mxu1 %v5703_v32  ;;  %v5792_v31 = vld [vmem:[#allocation7 + $0x4c4] ss:$16 sps:$4 sm:$0xff]   ;;  %v5795_v32 = vld [vmem:[#allocation7 + $0x4cc] ss:$16 sps:$4 sm:$0xff]  }
 0x356   :  { %4527 = vmatprep.subr.bf16.mxu0 %v5708_v35  ;;  %4691 = vmatprep.subr.bf16.mxu1 %v5711_v33  ;;  %v5790_v35 = vld [vmem:[#allocation7 + $0x4c0] ss:$16 sps:$4 sm:$0xff]   ;;  %v5793_v33 = vld [vmem:[#allocation7 + $0x4c8] ss:$16 sps:$4 sm:$0xff]  }
 0x359   :  { %4528 = vmatpush1.bf16.msra.mxu0 %v5706_v34  ;;  %4692 = vmatpush1.bf16.msra.mxu1 %v5709_v63  ;;  %v5798_v34 = vld [vmem:[#allocation7 + $0x4e4] ss:$16 sps:$4 sm:$0xff]   ;;  %v5801_v63 = vld [vmem:[#allocation7 + $0x4ec] ss:$16 sps:$4 sm:$0xff]  }
 0x35a   :  { %4529 = vmatprep.subr.bf16.mxu0 %v5714_v36  ;;  %4693 = vmatprep.subr.bf16.mxu1 %v5717_v37  ;;  %v5796_v36 = vld [vmem:[#allocation7 + $0x4e0] ss:$16 sps:$4 sm:$0xff]   ;;  %v5799_v37 = vld [vmem:[#allocation7 + $0x4e8] ss:$16 sps:$4 sm:$0xff]  }
 0x35d   :  { %4530 = vmatpush1.bf16.msra.mxu0 %v5712_v38  ;;  %4694 = vmatpush1.bf16.msra.mxu1 %v5715_v48  ;;  %v5804_v38 = vld [vmem:[#allocation7 + $0x504] ss:$16 sps:$4 sm:$0xff]   ;;  %v5807_v48 = vld [vmem:[#allocation7 + $0x50c] ss:$16 sps:$4 sm:$0xff]  }
 0x35e   :  { %4531 = vmatprep.subr.bf16.mxu0 %v5720_v40  ;;  %4695 = vmatprep.subr.bf16.mxu1 %v5723_v41  ;;  %v5802_v40 = vld [vmem:[#allocation7 + $0x500] ss:$16 sps:$4 sm:$0xff]   ;;  %v5805_v41 = vld [vmem:[#allocation7 + $0x508] ss:$16 sps:$4 sm:$0xff]  }
 0x361   :  { %4532 = vmatpush1.bf16.msra.mxu0 %v5718_v42  ;;  %4696 = vmatpush1.bf16.msra.mxu1 %v5721_v43  ;;  %v5810_v42 = vld [vmem:[#allocation7 + $0x524] ss:$16 sps:$4 sm:$0xff]   ;;  %v5813_v43 = vld [vmem:[#allocation7 + $0x52c] ss:$16 sps:$4 sm:$0xff]  }
 0x362   :  { %4533 = vmatprep.subr.bf16.mxu0 %v5726_v23  ;;  %4697 = vmatprep.subr.bf16.mxu1 %v5729_v44  ;;  %v5808_v23 = vld [vmem:[#allocation7 + $0x520] ss:$16 sps:$4 sm:$0xff]   ;;  %v5811_v44 = vld [vmem:[#allocation7 + $0x528] ss:$16 sps:$4 sm:$0xff]  }
 0x365   :  { %4534 = vmatpush1.bf16.msra.mxu0 %v5724_v45  ;;  %4698 = vmatpush1.bf16.msra.mxu1 %v5727_v46  ;;  %v5816_v45 = vld [vmem:[#allocation7 + $0x544] ss:$16 sps:$4 sm:$0xff]   ;;  %v5819_v46 = vld [vmem:[#allocation7 + $0x54c] ss:$16 sps:$4 sm:$0xff]  }
 0x366   :  { %4535 = vmatprep.subr.bf16.mxu0 %v5732_v47  ;;  %4699 = vmatprep.subr.bf16.mxu1 %v5735_v15  ;;  %v5814_v47 = vld [vmem:[#allocation7 + $0x540] ss:$16 sps:$4 sm:$0xff]   ;;  %v5817_v15 = vld [vmem:[#allocation7 + $0x548] ss:$16 sps:$4 sm:$0xff]  }
 0x369   :  { %4536 = vmatpush1.bf16.msra.mxu0 %v5730_v49  ;;  %4700 = vmatpush1.bf16.msra.mxu1 %v5733_v50  ;;  %v5822_v49 = vld [vmem:[#allocation7 + $0x564] ss:$16 sps:$4 sm:$0xff]   ;;  %v5825_v50 = vld [vmem:[#allocation7 + $0x56c] ss:$16 sps:$4 sm:$0xff]  }
 0x36a   :  { %4537 = vmatprep.subr.bf16.mxu0 %v5738_v51  ;;  %4701 = vmatprep.subr.bf16.mxu1 %v5741_v52  ;;  %v5820_v51 = vld [vmem:[#allocation7 + $0x560] ss:$16 sps:$4 sm:$0xff]   ;;  %v5823_v52 = vld [vmem:[#allocation7 + $0x568] ss:$16 sps:$4 sm:$0xff]  }
 0x36d   :  { %4538 = vmatpush1.bf16.msra.mxu0 %v5736_v54  ;;  %4702 = vmatpush1.bf16.msra.mxu1 %v5739_v56  ;;  %v5828_v54 = vld [vmem:[#allocation7 + $0x584] ss:$16 sps:$4 sm:$0xff]   ;;  %v5831_v56 = vld [vmem:[#allocation7 + $0x58c] ss:$16 sps:$4 sm:$0xff]  }
 0x36e   :  { %4539 = vmatprep.subr.bf16.mxu0 %v5744_v57  ;;  %4703 = vmatprep.subr.bf16.mxu1 %v5747_v1  ;;  %v5826_v57 = vld [vmem:[#allocation7 + $0x580] ss:$16 sps:$4 sm:$0xff]   ;;  %v5829_v1 = vld [vmem:[#allocation7 + $0x588] ss:$16 sps:$4 sm:$0xff]  }
 0x371   :  { %4540 = vmatpush1.bf16.msra.mxu0 %v5742_v2  ;;  %4704 = vmatpush1.bf16.msra.mxu1 %v5745_v29  ;;  %v5834_v2 = vld [vmem:[#allocation7 + $0x5a4] ss:$16 sps:$4 sm:$0xff]   ;;  %v5837_v29 = vld [vmem:[#allocation7 + $0x5ac] ss:$16 sps:$4 sm:$0xff]  }
 0x372   :  { %4541 = vmatprep.subr.bf16.mxu0 %v5750_v3  ;;  %4705 = vmatprep.subr.bf16.mxu1 %v5753_v7  ;;  %v5832_v3 = vld [vmem:[#allocation7 + $0x5a0] ss:$16 sps:$4 sm:$0xff]   ;;  %v5835_v7 = vld [vmem:[#allocation7 + $0x5a8] ss:$16 sps:$4 sm:$0xff]  }
 0x375   :  { %4542 = vmatpush1.bf16.msra.mxu0 %v5748_v11  ;;  %4706 = vmatpush1.bf16.msra.mxu1 %v5751_v10  ;;  %v5840_v11 = vld [vmem:[#allocation7 + $0x5c4] ss:$16 sps:$4 sm:$0xff]   ;;  %v5843_v10 = vld [vmem:[#allocation7 + $0x5cc] ss:$16 sps:$4 sm:$0xff]  }
 0x376   :  { %4552 = vmatprep.subr.bf16.mxu0 %v5756_v14  ;;  %4716 = vmatprep.subr.bf16.mxu1 %v5759_v4  ;;  %v5838_v14 = vld [vmem:[#allocation7 + $0x5c0] ss:$16 sps:$4 sm:$0xff]   ;;  %v5841_v4 = vld [vmem:[#allocation7 + $0x5c8] ss:$16 sps:$4 sm:$0xff]  }
 0x378   :  { %4544 = vmatmul.mubr.bf16.vlgmr.msra.gmra.mrb[8].mxu0 %v2928_v6  ;;  %4708 = vmatmul.mubr.bf16.vlgmr.msra.gmra.mrb[8].mxu1 %v2928_v6  ;;  %v5849_v6 = vld [vmem:[#allocation7 + $0x5ec] ss:$16 sps:$4 sm:$0xff]  }
 0x379   :  { %4553 = vmatpush1.bf16.msra.mxu0 %v5754_v5  ;;  %4584 = vmatprep.mubr.bf16.mxu0 %v2931_v12  ;;  %v5846_v5 = vld [vmem:[#allocation7 + $0x5e4] ss:$16 sps:$4 sm:$0xff]  }
 0x37a   :  { %4717 = vmatpush1.bf16.msra.mxu1 %v5757_v8  ;;  %4748 = vmatprep.mubr.bf16.mxu1 %v2931_v12  ;;  %v5844_v8 = vld [vmem:[#allocation7 + $0x5e0] ss:$16 sps:$4 sm:$0xff]   ;;  %v5847_v12 = vld [vmem:[#allocation7 + $0x5e8] ss:$16 sps:$4 sm:$0xff]  }
 0x37b   :  { %4554 = vmatprep.subr.bf16.mxu0 %v5762_v13  ;;  %4718 = vmatprep.subr.bf16.mxu1 %v5765_v16  ;;  %v5852_v13 = vld [vmem:[#allocation7 + $0x604] ss:$16 sps:$4 sm:$0xff]   ;;  %v5855_v16 = vld [vmem:[#allocation7 + $0x60c] ss:$16 sps:$4 sm:$0xff]  }
 0x37d   :  { %4555 = vmatpush1.bf16.msra.mxu0 %v5760_v55  ;;  %v5850_v55 = vld [vmem:[#allocation7 + $0x600] ss:$16 sps:$4 sm:$0xff]  }
 0x37e   :  { %4719 = vmatpush1.bf16.msra.mxu1 %v5763_v17  ;;  %4556 = vmatprep.subr.bf16.mxu0 %v5768_v18  ;;  %v2930_v17 = vpack.c.bf16 %v6207_v61, %v6207_v61  ;;  %v5853_v18 = vld [vmem:[#allocation7 + $0x608] ss:$16 sps:$4 sm:$0xff]   ;;  %v5862_v61 = vld [vmem:[#allocation7 + $0x640] ss:$16 sps:$4 sm:$0xff]  }
 0x37f   :  { %4720 = vmatprep.subr.bf16.mxu1 %v5771_v58  ;;  %v5858_v58 = vld [vmem:[#allocation7 + $0x624] ss:$16 sps:$4 sm:$0xff]  }
 0x381   :  { %4557 = vmatpush1.bf16.msra.mxu0 %v5766_v59  ;;  %v2933_v59 = vpack.c.bf16 %v6209_v62, %v6209_v62  ;;  %v5873_v62 = vld [vmem:[#allocation7 + $0x66c] ss:$16 sps:$4 sm:$0xff]  }
 0x382   :  { %4721 = vmatpush1.bf16.msra.mxu1 %v5769_v19  ;;  %4558 = vmatprep.subr.bf16.mxu0 %v5774_v60  ;;  %v5861_v19 = vld [vmem:[#allocation7 + $0x62c] ss:$16 sps:$4 sm:$0xff]   ;;  %v5856_v60 = vld [vmem:[#allocation7 + $0x620] ss:$16 sps:$4 sm:$0xff]  }
 0x383   :  { %4722 = vmatprep.subr.bf16.mxu1 %v5777_v20  ;;  %v5859_v20 = vld [vmem:[#allocation7 + $0x628] ss:$16 sps:$4 sm:$0xff]  }
 0x385   :  { %4559 = vmatpush1.bf16.msra.mxu0 %v5772_v9  ;;  %v5864_v9 = vld [vmem:[#allocation7 + $0x644] ss:$16 sps:$4 sm:$0xff]  }
 0x386   :  { %4723 = vmatpush1.bf16.msra.mxu1 %v5775_v21  ;;  %4560 = vmatprep.subr.bf16.mxu0 %v5780_v24  ;;  %v5867_v21 = vld [vmem:[#allocation7 + $0x64c] ss:$16 sps:$4 sm:$0xff]   ;;  %v5865_v24 = vld [vmem:[#allocation7 + $0x648] ss:$16 sps:$4 sm:$0xff]  }
 0x387   :  { %4724 = vmatprep.subr.bf16.mxu1 %v5783_v22  ;;  %v5870_v22 = vld [vmem:[#allocation7 + $0x664] ss:$16 sps:$4 sm:$0xff]  }
 0x389   :  { %4561 = vmatpush1.bf16.msra.mxu0 %v5778_v25  ;;  %v5868_v25 = vld [vmem:[#allocation7 + $0x660] ss:$16 sps:$4 sm:$0xff]  }
 0x38a   :  { %4725 = vmatpush1.bf16.msra.mxu1 %v5781_v26  ;;  %4562 = vmatprep.subr.bf16.mxu0 %v5786_v27  ;;  %v5871_v26 = vld [vmem:[#allocation7 + $0x668] ss:$16 sps:$4 sm:$0xff]   ;;  %v5876_v27 = vld [vmem:[#allocation7 + $0x684] ss:$16 sps:$4 sm:$0xff]  }
 0x38b   :  { %4726 = vmatprep.subr.bf16.mxu1 %v5789_v28  ;;  %v5879_v28 = vld [vmem:[#allocation7 + $0x68c] ss:$16 sps:$4 sm:$0xff]  }
 0x38d   :  { %4563 = vmatpush1.bf16.msra.mxu0 %v5784_v30  ;;  %v5874_v30 = vld [vmem:[#allocation7 + $0x680] ss:$16 sps:$4 sm:$0xff]  }
 0x38e   :  { %4727 = vmatpush1.bf16.msra.mxu1 %v5787_v39  ;;  %4564 = vmatprep.subr.bf16.mxu0 %v5792_v31  ;;  %v5877_v39 = vld [vmem:[#allocation7 + $0x688] ss:$16 sps:$4 sm:$0xff]   ;;  %v5882_v31 = vld [vmem:[#allocation7 + $0x6a4] ss:$16 sps:$4 sm:$0xff]  }
 0x38f   :  { %4728 = vmatprep.subr.bf16.mxu1 %v5795_v32  ;;  %v5885_v32 = vld [vmem:[#allocation7 + $0x6ac] ss:$16 sps:$4 sm:$0xff]  }
 0x391   :  { %4565 = vmatpush1.bf16.msra.mxu0 %v5790_v35  ;;  %v5880_v35 = vld [vmem:[#allocation7 + $0x6a0] ss:$16 sps:$4 sm:$0xff]  }
 0x392   :  { %4729 = vmatpush1.bf16.msra.mxu1 %v5793_v33  ;;  %4566 = vmatprep.subr.bf16.mxu0 %v5798_v34  ;;  %v5883_v33 = vld [vmem:[#allocation7 + $0x6a8] ss:$16 sps:$4 sm:$0xff]   ;;  %v5888_v34 = vld [vmem:[#allocation7 + $0x6c4] ss:$16 sps:$4 sm:$0xff]  }
 0x393   :  { %4730 = vmatprep.subr.bf16.mxu1 %v5801_v63  ;;  %v5891_v63 = vld [vmem:[#allocation7 + $0x6cc] ss:$16 sps:$4 sm:$0xff]  }
 0x395   :  { %4567 = vmatpush1.bf16.msra.mxu0 %v5796_v36  ;;  %v5886_v36 = vld [vmem:[#allocation7 + $0x6c0] ss:$16 sps:$4 sm:$0xff]  }
 0x396   :  { %4731 = vmatpush1.bf16.msra.mxu1 %v5799_v37  ;;  %4568 = vmatprep.subr.bf16.mxu0 %v5804_v38  ;;  %v5889_v37 = vld [vmem:[#allocation7 + $0x6c8] ss:$16 sps:$4 sm:$0xff]   ;;  %v5894_v38 = vld [vmem:[#allocation7 + $0x6e4] ss:$16 sps:$4 sm:$0xff]  }
 0x397   :  { %4732 = vmatprep.subr.bf16.mxu1 %v5807_v48  ;;  %v5897_v48 = vld [vmem:[#allocation7 + $0x6ec] ss:$16 sps:$4 sm:$0xff]  }
 0x399   :  { %4569 = vmatpush1.bf16.msra.mxu0 %v5802_v40  ;;  %v5892_v40 = vld [vmem:[#allocation7 + $0x6e0] ss:$16 sps:$4 sm:$0xff]  }
 0x39a   :  { %4733 = vmatpush1.bf16.msra.mxu1 %v5805_v41  ;;  %4570 = vmatprep.subr.bf16.mxu0 %v5810_v42  ;;  %v5895_v41 = vld [vmem:[#allocation7 + $0x6e8] ss:$16 sps:$4 sm:$0xff]   ;;  %v5900_v42 = vld [vmem:[#allocation7 + $0x704] ss:$16 sps:$4 sm:$0xff]  }
 0x39b   :  { %4734 = vmatprep.subr.bf16.mxu1 %v5813_v43  ;;  %v5903_v43 = vld [vmem:[#allocation7 + $0x70c] ss:$16 sps:$4 sm:$0xff]  }
 0x39d   :  { %4571 = vmatpush1.bf16.msra.mxu0 %v5808_v23  ;;  %v5898_v23 = vld [vmem:[#allocation7 + $0x700] ss:$16 sps:$4 sm:$0xff]  }
 0x39e   :  { %4735 = vmatpush1.bf16.msra.mxu1 %v5811_v44  ;;  %4572 = vmatprep.subr.bf16.mxu0 %v5816_v45  ;;  %v5901_v44 = vld [vmem:[#allocation7 + $0x708] ss:$16 sps:$4 sm:$0xff]   ;;  %v5906_v45 = vld [vmem:[#allocation7 + $0x724] ss:$16 sps:$4 sm:$0xff]  }
 0x39f   :  { %4736 = vmatprep.subr.bf16.mxu1 %v5819_v46  ;;  %v5909_v46 = vld [vmem:[#allocation7 + $0x72c] ss:$16 sps:$4 sm:$0xff]  }
 0x3a1   :  { %4573 = vmatpush1.bf16.msra.mxu0 %v5814_v47  ;;  %v5904_v47 = vld [vmem:[#allocation7 + $0x720] ss:$16 sps:$4 sm:$0xff]  }
 0x3a2   :  { %4737 = vmatpush1.bf16.msra.mxu1 %v5817_v15  ;;  %4574 = vmatprep.subr.bf16.mxu0 %v5822_v49  ;;  %v5907_v15 = vld [vmem:[#allocation7 + $0x728] ss:$16 sps:$4 sm:$0xff]   ;;  %v5912_v49 = vld [vmem:[#allocation7 + $0x744] ss:$16 sps:$4 sm:$0xff]  }
 0x3a3   :  { %4738 = vmatprep.subr.bf16.mxu1 %v5825_v50  ;;  %v5915_v50 = vld [vmem:[#allocation7 + $0x74c] ss:$16 sps:$4 sm:$0xff]  }
 0x3a5   :  { %4575 = vmatpush1.bf16.msra.mxu0 %v5820_v51  ;;  %v5910_v51 = vld [vmem:[#allocation7 + $0x740] ss:$16 sps:$4 sm:$0xff]  }
 0x3a6   :  { %4739 = vmatpush1.bf16.msra.mxu1 %v5823_v52  ;;  %4576 = vmatprep.subr.bf16.mxu0 %v5828_v54  ;;  %v5913_v52 = vld [vmem:[#allocation7 + $0x748] ss:$16 sps:$4 sm:$0xff]   ;;  %v5918_v54 = vld [vmem:[#allocation7 + $0x764] ss:$16 sps:$4 sm:$0xff]  }
 0x3a7   :  { %4740 = vmatprep.subr.bf16.mxu1 %v5831_v56  ;;  %v5921_v56 = vld [vmem:[#allocation7 + $0x76c] ss:$16 sps:$4 sm:$0xff]  }
 0x3a9   :  { %4577 = vmatpush1.bf16.msra.mxu0 %v5826_v57  ;;  %v5916_v57 = vld [vmem:[#allocation7 + $0x760] ss:$16 sps:$4 sm:$0xff]  }
 0x3aa   :  { %4741 = vmatpush1.bf16.msra.mxu1 %v5829_v1  ;;  %4578 = vmatprep.subr.bf16.mxu0 %v5834_v2  ;;  %v5919_v1 = vld [vmem:[#allocation7 + $0x768] ss:$16 sps:$4 sm:$0xff]   ;;  %v5924_v2 = vld [vmem:[#allocation7 + $0x784] ss:$16 sps:$4 sm:$0xff]  }
 0x3ab   :  { %4742 = vmatprep.subr.bf16.mxu1 %v5837_v29  ;;  %v5927_v29 = vld [vmem:[#allocation7 + $0x78c] ss:$16 sps:$4 sm:$0xff]  }
 0x3ad   :  { %4579 = vmatpush1.bf16.msra.mxu0 %v5832_v3  ;;  %v5922_v3 = vld [vmem:[#allocation7 + $0x780] ss:$16 sps:$4 sm:$0xff]  }
 0x3ae   :  { %4743 = vmatpush1.bf16.msra.mxu1 %v5835_v7  ;;  %4580 = vmatprep.subr.bf16.mxu0 %v5840_v11  ;;  %v5925_v7 = vld [vmem:[#allocation7 + $0x788] ss:$16 sps:$4 sm:$0xff]   ;;  %v5930_v11 = vld [vmem:[#allocation7 + $0x7a4] ss:$16 sps:$4 sm:$0xff]  }
 0x3af   :  { %4744 = vmatprep.subr.bf16.mxu1 %v5843_v10  ;;  %v5933_v10 = vld [vmem:[#allocation7 + $0x7ac] ss:$16 sps:$4 sm:$0xff]  }
 0x3b1   :  { %4581 = vmatpush1.bf16.msra.mxu0 %v5838_v14  ;;  %v5928_v14 = vld [vmem:[#allocation7 + $0x7a0] ss:$16 sps:$4 sm:$0xff]  }
 0x3b2   :  { %4745 = vmatpush1.bf16.msra.mxu1 %v5841_v4  ;;  %4582 = vmatprep.subr.bf16.mxu0 %v5846_v5  ;;  %v5931_v4 = vld [vmem:[#allocation7 + $0x7a8] ss:$16 sps:$4 sm:$0xff]   ;;  %v5936_v5 = vld [vmem:[#allocation7 + $0x7c4] ss:$16 sps:$4 sm:$0xff]  }
 0x3b3   :  { %4746 = vmatprep.subr.bf16.mxu1 %v5849_v6  ;;  %v5939_v6 = vld [vmem:[#allocation7 + $0x7cc] ss:$16 sps:$4 sm:$0xff]  }
 0x3b5   :  { %4583 = vmatpush1.bf16.msra.mxu0 %v5844_v8  ;;  %v5934_v8 = vld [vmem:[#allocation7 + $0x7c0] ss:$16 sps:$4 sm:$0xff]  }
 0x3b6   :  { %4747 = vmatpush1.bf16.msra.mxu1 %v5847_v12  ;;  %4593 = vmatprep.subr.bf16.mxu0 %v5852_v13  ;;  %v5937_v12 = vld [vmem:[#allocation7 + $0x7c8] ss:$16 sps:$4 sm:$0xff]   ;;  %v5942_v13 = vld [vmem:[#allocation7 + $0x7e4] ss:$16 sps:$4 sm:$0xff]  }
 0x3b7   :  { %4757 = vmatprep.subr.bf16.mxu1 %v5855_v16  ;;  %v5945_v16 = vld [vmem:[#allocation7 + $0x7ec] ss:$16 sps:$4 sm:$0xff]  }
 0x3b8   :  { %4585 = vmatmul.mubr.bf16.vlgmr.msra.gmra.mrb[8].mxu0 %v2930_v17 }
 0x3b9   :  { %4749 = vmatmul.mubr.bf16.vlgmr.msra.gmra.mrb[8].mxu1 %v2930_v17  ;;  %4594 = vmatpush1.bf16.msra.mxu0 %v5850_v55  ;;  %v5940_v55 = vld [vmem:[#allocation7 + $0x7e0] ss:$16 sps:$4 sm:$0xff]   ;;  %v5943_v17 = vld [vmem:[#allocation7 + $0x7e8] ss:$16 sps:$4 sm:$0xff]  }
 0x3ba   :  { %4625 = vmatprep.mubr.bf16.mxu0 %v2933_v59  ;;  %4758 = vmatpush1.bf16.msra.mxu1 %v5853_v18  ;;  %v2932_v18 = vpack.c.bf16 %v6211_v0, %v6211_v0 }
 0x3bb   :  { %4789 = vmatprep.mubr.bf16.mxu1 %v2933_v59  ;;  %4595 = vmatprep.subr.bf16.mxu0 %v5858_v58 }
 0x3bc   :  { %4759 = vmatprep.subr.bf16.mxu1 %v5861_v19 }
 0x3bd   :  { %4596 = vmatpush1.bf16.msra.mxu0 %v5856_v60 }
 0x3be   :  { %4760 = vmatpush1.bf16.msra.mxu1 %v5859_v20  ;;  %4597 = vmatprep.subr.bf16.mxu0 %v5864_v9 }
 0x3bf   :  { %4761 = vmatprep.subr.bf16.mxu1 %v5867_v21 }
 0x3c1   :  { %4598 = vmatpush1.bf16.msra.mxu0 %v5862_v61 }
 0x3c2   :  { %4762 = vmatpush1.bf16.msra.mxu1 %v5865_v24  ;;  %4599 = vmatprep.subr.bf16.mxu0 %v5870_v22 }
 0x3c3   :  { %4763 = vmatprep.subr.bf16.mxu1 %v5873_v62 }
 0x3c5   :  { %4600 = vmatpush1.bf16.msra.mxu0 %v5868_v25 }
 0x3c6   :  { %4764 = vmatpush1.bf16.msra.mxu1 %v5871_v26  ;;  %4601 = vmatprep.subr.bf16.mxu0 %v5876_v27 }
 0x3c7   :  { %4765 = vmatprep.subr.bf16.mxu1 %v5879_v28 }
 0x3c9   :  { %4602 = vmatpush1.bf16.msra.mxu0 %v5874_v30 }
 0x3ca   :  { %4766 = vmatpush1.bf16.msra.mxu1 %v5877_v39  ;;  %4603 = vmatprep.subr.bf16.mxu0 %v5882_v31 }
 0x3cb   :  { %4767 = vmatprep.subr.bf16.mxu1 %v5885_v32 }
 0x3cd   :  { %4604 = vmatpush1.bf16.msra.mxu0 %v5880_v35 }
 0x3ce   :  { %4768 = vmatpush1.bf16.msra.mxu1 %v5883_v33  ;;  %4605 = vmatprep.subr.bf16.mxu0 %v5888_v34 }
 0x3cf   :  { %4769 = vmatprep.subr.bf16.mxu1 %v5891_v63 }
 0x3d1   :  { %4606 = vmatpush1.bf16.msra.mxu0 %v5886_v36 }
 0x3d2   :  { %4770 = vmatpush1.bf16.msra.mxu1 %v5889_v37  ;;  %4607 = vmatprep.subr.bf16.mxu0 %v5894_v38 }
 0x3d3   :  { %4771 = vmatprep.subr.bf16.mxu1 %v5897_v48 }
 0x3d5   :  { %4608 = vmatpush1.bf16.msra.mxu0 %v5892_v40 }
 0x3d6   :  { %4772 = vmatpush1.bf16.msra.mxu1 %v5895_v41  ;;  %4609 = vmatprep.subr.bf16.mxu0 %v5900_v42 }
 0x3d7   :  { %4773 = vmatprep.subr.bf16.mxu1 %v5903_v43 }
 0x3d9   :  { %4610 = vmatpush1.bf16.msra.mxu0 %v5898_v23 }
 0x3da   :  { %4774 = vmatpush1.bf16.msra.mxu1 %v5901_v44  ;;  %4611 = vmatprep.subr.bf16.mxu0 %v5906_v45 }
 0x3db   :  { %4775 = vmatprep.subr.bf16.mxu1 %v5909_v46 }
 0x3dd   :  { %4612 = vmatpush1.bf16.msra.mxu0 %v5904_v47 }
 0x3de   :  { %4776 = vmatpush1.bf16.msra.mxu1 %v5907_v15  ;;  %4613 = vmatprep.subr.bf16.mxu0 %v5912_v49 }
 0x3df   :  { %4777 = vmatprep.subr.bf16.mxu1 %v5915_v50 }
 0x3e1   :  { %4614 = vmatpush1.bf16.msra.mxu0 %v5910_v51 }
 0x3e2   :  { %4778 = vmatpush1.bf16.msra.mxu1 %v5913_v52  ;;  %4615 = vmatprep.subr.bf16.mxu0 %v5918_v54 }
 0x3e3   :  { %4779 = vmatprep.subr.bf16.mxu1 %v5921_v56 }
 0x3e5   :  { %4616 = vmatpush1.bf16.msra.mxu0 %v5916_v57 }
 0x3e6   :  { %4780 = vmatpush1.bf16.msra.mxu1 %v5919_v1  ;;  %4617 = vmatprep.subr.bf16.mxu0 %v5924_v2 }
 0x3e7   :  { %4781 = vmatprep.subr.bf16.mxu1 %v5927_v29 }
 0x3e9   :  { %4618 = vmatpush1.bf16.msra.mxu0 %v5922_v3 }
 0x3ea   :  { %4782 = vmatpush1.bf16.msra.mxu1 %v5925_v7  ;;  %4619 = vmatprep.subr.bf16.mxu0 %v5930_v11 }
 0x3eb   :  { %4783 = vmatprep.subr.bf16.mxu1 %v5933_v10 }
 0x3ed   :  { %4620 = vmatpush1.bf16.msra.mxu0 %v5928_v14 }
 0x3ee   :  { %4784 = vmatpush1.bf16.msra.mxu1 %v5931_v4  ;;  %4621 = vmatprep.subr.bf16.mxu0 %v5936_v5 }
 0x3ef   :  { %4785 = vmatprep.subr.bf16.mxu1 %v5939_v6 }
 0x3f1   :  { %4622 = vmatpush1.bf16.msra.mxu0 %v5934_v8 }
 0x3f2   :  { %4786 = vmatpush1.bf16.msra.mxu1 %v5937_v12  ;;  %4623 = vmatprep.subr.bf16.mxu0 %v5942_v13 }
 0x3f3   :  { %4787 = vmatprep.subr.bf16.mxu1 %v5945_v16 }
 0x3f5   :  { %4624 = vmatpush1.bf16.msra.mxu0 %v5940_v55 }
 0x3f6   :  { %4788 = vmatpush1.bf16.msra.mxu1 %v5943_v17 }
 0x3f8   :  { %4626 = vmatmul.mubr.bf16.vlgmr.msra.gmra.mrb[8].mxu0 %v2932_v18 }
 0x3f9   :  { %4790 = vmatmul.mubr.bf16.vlgmr.msra.gmra.mrb[8].mxu1 %v2932_v18 }
 0x4cb   :  { %v4627_v58 = vpop.f32.mrb[8].mxu0 }
 0x4cc   :  { %v4798_v59 = vmul.f32 %v4627_v58, %v4627_v58  ;;  %v4791_v19 = vpop.f32.mrb[8].mxu1  ;;  %v4629_v60 = vpop.f32.mrb[9].mxu0 }
 0x4cd   :  { %v4800_v20 = vmul.f32 %v4791_v19, %v4791_v19  ;;  %v4799_v9 = vmul.f32 %v4629_v60, %v4629_v60  ;;  %v4793_v21 = vpop.f32.mrb[9].mxu1  ;;  %v4631_v61 = vpop.f32.mrb[10].mxu0 }
 0x4ce   :  { %v4802_v24 = vsel %vm2899_vm0, %v4798_v59, 0.0  ;;  %v4795_v22 = vpop.f32.mrb[10].mxu1  ;;  %v4632_v62 = vpop.f32.mrb[11].mxu0  ;;  %v4801_v26 = vmul.f32 %v4793_v21, %v4793_v21 }
 0x4cf   :  { %v4803_v25 = vsel %vm2899_vm0, %v4799_v9, 0.0  ;;  %v4796_v27 = vpop.f32.mrb[11].mxu1  ;;  %v4805_v0 = vsel %vm2899_vm0, %v4800_v20, 0.0 }
 0x4d0   :  { %v4804_v28 = vadd.f32 %v4803_v25, %v4802_v24  ;;  %v4807_v39 = vsel %vm2899_vm0, %v4801_v26, 0.0 }
 0x4d2   :  { %v4806_v30 = vadd.f32 %v4805_v0, %v4804_v28 }
 0x4d4   :  { %v4808_v31 = vadd.f32 %v4807_v39, %v4806_v30 }
 0x4d6   :  { %4809 = vadd.xlane.f32.xlu0 %v4808_v31 }
 0x563   :  { %v4810_v32 = vpop.xlane.xlu0 %4809 }
 0x564   :  { %5948 = vrsqrt.f32 %v4810_v32 }
 0x56e   :  { %v5949_v35 = vpop.eup %5948 }
 0x56f   :  { %v4812_v33 = vmul.f32 %v5949_v35, %v4627_v58  ;;  %v4813_v34 = vmul.f32 %v5949_v35, %v4629_v60  ;;  %v4814_v63 = vmul.f32 %v5949_v35, %v4791_v19  ;;  %v4815_v36 = vmul.f32 %v5949_v35, %v4793_v21 }
 0x571   :  { %v4820_v37 = vcombine.low %v4812_v33, %v4813_v34  ;;  %v4821_v38 = vcombine.low %v4814_v63, %v4815_v36 }
 0x573   :  { %v4828_v48 = vrot.slane %v4820_v37, %v6109_v53  ;;  %v4835_v40 = vrot.slane %v4821_v38, %v6109_v53 }
 0x575   :  { %v4836_v41 = vcombine.low %v4828_v48, %v4835_v40 }
 0x577   :  { %4838 = vst [vmem:[#allocation8] sm:$0xff] %v4836_v41 }
 0x578   :  { %6027 = shalt.err (!%p6024_p0)
}
 0x579   :  { %s6028_s27 = scalar_lea.hbm %s6244_s3, 128 }
 0x57a   :  { %p6029_p1 = scmp.ne.s32.totalorder %s6244_s3, %s6028_s27  ;;  %p6032_p2 = scmp.lt.u32.totalorder %s6028_s27, %s6244_s3 }
 0x57c   :  { %p6034_p3 = pnand %p6032_p2, %p6029_p1 }
 0x57e   :  { %6037 = shalt.err (!%p6034_p3)
}
 0x57f   :  { %4848 = dma.vmem_to_hbm [thread:$0]  %s4846_s23, 128, %s6244_s3, [#allocation4]  }
 0x580   :  { %6042 = dma.done.wait [#allocation4], 128  }
 0x581   :  { %6043 = vsyncadd [#allocation4], 4294967168 }
 0x582   :  { %4852 = vsyncpa [#allocation3], 1 }
 0x583   :  { %4853 = vsyncpa [#allocation6], 1 }
 0x584   :  { %4854 = vsyncpa [#allocation4], 1 }

</bundles_post_ra>
